<compile_context>
chip_gen: v6e
topology: v6e:2x2x1
jax: 0.10.0
libtpu: 0.0.40
codegen_flags: <defaults>
</compile_context>

<pallas_src>
import jax
import jax.numpy as jnp
from jax.experimental import pallas as pl
from jax.experimental.pallas import tpu as pltpu

# skimage color-conversion constants
_XYZ_FROM_RGB = (
    (0.412453, 0.357580, 0.180423),
    (0.212671, 0.715160, 0.072169),
    (0.019334, 0.119193, 0.950227),
)
_WHITE = (0.95047, 1.0, 1.08883)  # D65, 2deg observer (skimage default)
_TWO_PI = 6.283185307179586

# bit-hack seed constant: 2**23 * (127 - 0.0450466)
_BIAS_CORR = 1064975339.0


def _inv_nth_root(u, n, iters):
    """u ** (-1/n) for u > 0: bitcast exponent seed + Newton, VPU-only (no EUP)."""
    inv_n = 1.0 / n
    bits = pltpu.bitcast(u, jnp.int32).astype(jnp.float32)
    seed_bits = (1.0 + inv_n) * _BIAS_CORR - inv_n * bits
    y = pltpu.bitcast(seed_bits.astype(jnp.int32), jnp.float32)
    for _ in range(iters):
        yn = y
        for _ in range(n - 1):
            yn = yn * y  # y ** n
        # y <- y * ((n+1) - u*y^n) / n     (divide-free Newton for u^(-1/n))
        y = y * ((1.0 + inv_n) - inv_n * (u * yn))
    return y


def _srgb_to_linear(c):
    # c arrives in [-1, 1]; module maps it to [0, 1] first.
    c01 = (c + 1.0) * 0.5
    x = (c01 + 0.055) * (1.0 / 1.055)
    # gamma branch: x^2.4 = (x^2)^(6/5) = u^2 * (u^(-1/5))^4,  u = x^2
    # clamp u at the branch boundary so the seed/Newton never sees tiny values
    u = jnp.maximum(x * x, 8.0e-3)
    y = _inv_nth_root(u, 5, 4)              # y ~ u^(-1/5), ~f32 accuracy
    y2 = y * y
    gamma = (u * u) * (y2 * y2)              # u^2 * u^(-4/5) = x^2.4
    return jnp.where(c01 > 0.04045, gamma, c01 * (1.0 / 12.92))


def _lab_f(t):
    # cube root branch via inverse-cbrt Newton (VPU only): t^(1/3) = t * (t^(-1/3))^2
    tc = jnp.maximum(t, 0.008856)            # clamp at branch boundary
    y = _inv_nth_root(tc, 3, 3)              # y ~ tc^(-1/3)
    cbrt = tc * (y * y)
    return jnp.where(t > 0.008856, cbrt, 7.787 * t + 16.0 / 116.0)


def _hue_from_rgb(r, g, b):
    rl = _srgb_to_linear(r)
    gl = _srgb_to_linear(g)
    bl = _srgb_to_linear(b)

    x = _XYZ_FROM_RGB[0][0] * rl + _XYZ_FROM_RGB[0][1] * gl + _XYZ_FROM_RGB[0][2] * bl
    y = _XYZ_FROM_RGB[1][0] * rl + _XYZ_FROM_RGB[1][1] * gl + _XYZ_FROM_RGB[1][2] * bl
    z = _XYZ_FROM_RGB[2][0] * rl + _XYZ_FROM_RGB[2][1] * gl + _XYZ_FROM_RGB[2][2] * bl

    fx = _lab_f(x * (1.0 / _WHITE[0]))
    fy = _lab_f(y * (1.0 / _WHITE[1]))
    fz = _lab_f(z * (1.0 / _WHITE[2]))

    a = 500.0 * (fx - fy)
    bb = 200.0 * (fy - fz)

    h = jnp.arctan2(bb, a)
    # skimage lab2lch wraps hue into [0, 2*pi)
    return jnp.where(h < 0.0, h + _TWO_PI, h)


def hue_l2_kernel(x_ref, t_ref, o_ref):
    # x_ref, t_ref: (3, TS, 128) tiles in VMEM; o_ref: (1, 1) f32 in SMEM
    @pl.when(pl.program_id(1) == 0)
    def _init():
        o_ref[0, 0] = jnp.float32(0.0)

    r_i = x_ref[0].astype(jnp.float32)
    g_i = x_ref[1].astype(jnp.float32)
    b_i = x_ref[2].astype(jnp.float32)
    r_t = t_ref[0].astype(jnp.float32)
    g_t = t_ref[1].astype(jnp.float32)
    b_t = t_ref[2].astype(jnp.float32)

    hue_in = _hue_from_rgb(r_i, g_i, b_i)
    hue_tg = _hue_from_rgb(r_t, g_t, b_t)
    d = hue_in - hue_tg
    o_ref[0, 0] += jnp.sum(d * d)


def _round_up(a, m):
    return (a + m - 1) // m * m


def hue_l2_loss2(inp, tgt, *, tile_sublanes=256, nsplit=2):
    """inp, tgt: (N, 3, H, W), values nominally in [-1, 1]. Returns scalar f32."""
    _, C, H, W = inp.shape
    assert C == 3
    P = H * W

    # lane-dense layout: (3, H, W) -> (3, S, 128) with S a multiple of the tile
    s0 = -(-P // 128)                               # rows of 128 lanes
    ts = min(tile_sublanes, _round_up(max(s0, 1), 8))
    nsp = nsplit if s0 > ts else 1                  # only split across cores if enough work
    s_pad = _round_up(s0, ts * nsp)
    tiles_per_split = s_pad // (ts * nsp)

    def prep(a):
        a0 = a[0].reshape(3, P)                      # batch element 0, as in torch
        pad = s_pad * 128 - P
        if pad:
            a0 = jnp.pad(a0, ((0, 0), (0, pad)))     # identical pad for inp & tgt -> diff==0
        return a0.reshape(3, s_pad, 128)

    x3 = prep(inp)
    t3 = prep(tgt)

    npx = s_pad * 128
    cost = pl.CostEstimate(
        flops=400 * npx,                             # ~200 VPU flops / pixel / image
        transcendentals=4 * npx,                     # atan2 only (gamma/cbrt moved off EUP)
        bytes_accessed=2 * 3 * npx * x3.dtype.itemsize + 4 * nsp,
    )

    in_map = lambda i, j: (0, i * tiles_per_split + j, 0)
    in_spec = pl.BlockSpec((3, ts, 128), in_map)

    partials = pl.pallas_call(
        hue_l2_kernel,
        out_shape=jax.ShapeDtypeStruct((nsp, 1), jnp.float32),
        grid_spec=pltpu.PrefetchScalarGridSpec(
            num_scalar_prefetch=0,
            grid=(nsp, tiles_per_split),
            in_specs=[in_spec, in_spec],
            out_specs=pl.BlockSpec(
                (1, 1), lambda i, j: (i, 0),
                memory_space=pltpu.MemorySpace.SMEM),
        ),
        compiler_params=pltpu.CompilerParams(
            dimension_semantics=("parallel", "arbitrary"),
            vmem_limit_bytes=32 * 1024 * 1024,
        ),
        cost_estimate=cost,
    )(x3, t3)

    return jnp.sum(partials) / jnp.float32(P)


if __name__ == "__main__":
    key = jax.random.PRNGKey(0)
    k1, k2 = jax.random.split(key)
    # Small shapes consistent with the module: NCHW RGB images in [-1, 1].
    inp = jax.random.uniform(k1, (2, 3, 16, 16), jnp.float32, minval=-1.0, maxval=1.0)
    tgt = jax.random.uniform(k2, (2, 3, 16, 16), jnp.float32, minval=-1.0, maxval=1.0)

    loss = jax.jit(hue_l2_loss2)(inp, tgt)
    jax.block_until_ready(loss)
    print("KERNEL_OK")
</pallas_src>

<mosaic_0001>
module attributes {stable_mosaic.version = 11 : i64} {
  func.func @hue_l2_kernel(%arg0: i32, %arg1: i32, %arg2: memref<3x8x128xf32, #tpu.memory_space<vmem>>, %arg3: memref<3x8x128xf32, #tpu.memory_space<vmem>>, %arg4: memref<1x1xf32, #tpu.memory_space<smem>>) attributes {dimension_semantics = [#tpu.dimension_semantics<parallel>, #tpu.dimension_semantics<arbitrary>], iteration_bounds = array<i64: 1, 1>, scalar_prefetch = 0 : i64, scratch_operands = 0 : i64, tpu.core_type = #tpu.core_type<tc>, window_params = [{transform_indices = @transform_0, window_bounds = array<i64: 3, 8, 128>}, {transform_indices = @transform_1, window_bounds = array<i64: 3, 8, 128>}, {transform_indices = @transform_2, window_bounds = array<i64: 1, 1>}]} {
    %c0_i32 = arith.constant 0 : i32
    %0 = arith.cmpi eq, %arg1, %c0_i32 : i32
    %1 = arith.extui %0 : i1 to i32
    %c0_i32_0 = arith.constant 0 : i32
    %2 = arith.cmpi ne, %1, %c0_i32_0 : i32
    scf.if %2 {
      %cst_226 = arith.constant 0.000000e+00 : f32
      %c0_227 = arith.constant 0 : index
      %c0_228 = arith.constant 0 : index
      %774 = memref.load %arg4[%c0_227, %c0_228] : memref<1x1xf32, #tpu.memory_space<smem>>
      memref.store %cst_226, %arg4[%c0_227, %c0_228] : memref<1x1xf32, #tpu.memory_space<smem>>
    } else {
    }
    %c0 = arith.constant 0 : index
    %c0_1 = arith.constant 0 : index
    %c0_2 = arith.constant 0 : index
    %3 = vector.load %arg2[%c0, %c0_1, %c0_2] : memref<3x8x128xf32, #tpu.memory_space<vmem>>, vector<1x8x128xf32>
    %4 = vector.shape_cast %3 : vector<1x8x128xf32> to vector<8x128xf32>
    %c1 = arith.constant 1 : index
    %c0_3 = arith.constant 0 : index
    %c0_4 = arith.constant 0 : index
    %5 = vector.load %arg2[%c1, %c0_3, %c0_4] : memref<3x8x128xf32, #tpu.memory_space<vmem>>, vector<1x8x128xf32>
    %6 = vector.shape_cast %5 : vector<1x8x128xf32> to vector<8x128xf32>
    %c2 = arith.constant 2 : index
    %c0_5 = arith.constant 0 : index
    %c0_6 = arith.constant 0 : index
    %7 = vector.load %arg2[%c2, %c0_5, %c0_6] : memref<3x8x128xf32, #tpu.memory_space<vmem>>, vector<1x8x128xf32>
    %8 = vector.shape_cast %7 : vector<1x8x128xf32> to vector<8x128xf32>
    %c0_7 = arith.constant 0 : index
    %c0_8 = arith.constant 0 : index
    %c0_9 = arith.constant 0 : index
    %9 = vector.load %arg3[%c0_7, %c0_8, %c0_9] : memref<3x8x128xf32, #tpu.memory_space<vmem>>, vector<1x8x128xf32>
    %10 = vector.shape_cast %9 : vector<1x8x128xf32> to vector<8x128xf32>
    %c1_10 = arith.constant 1 : index
    %c0_11 = arith.constant 0 : index
    %c0_12 = arith.constant 0 : index
    %11 = vector.load %arg3[%c1_10, %c0_11, %c0_12] : memref<3x8x128xf32, #tpu.memory_space<vmem>>, vector<1x8x128xf32>
    %12 = vector.shape_cast %11 : vector<1x8x128xf32> to vector<8x128xf32>
    %c2_13 = arith.constant 2 : index
    %c0_14 = arith.constant 0 : index
    %c0_15 = arith.constant 0 : index
    %13 = vector.load %arg3[%c2_13, %c0_14, %c0_15] : memref<3x8x128xf32, #tpu.memory_space<vmem>>, vector<1x8x128xf32>
    %14 = vector.shape_cast %13 : vector<1x8x128xf32> to vector<8x128xf32>
    %cst = arith.constant 1.000000e+00 : f32
    %15 = vector.broadcast %cst : f32 to vector<8x128xf32>
    %16 = arith.addf %4, %15 : vector<8x128xf32>
    %cst_16 = arith.constant 5.000000e-01 : f32
    %17 = vector.broadcast %cst_16 : f32 to vector<8x128xf32>
    %18 = arith.mulf %16, %17 : vector<8x128xf32>
    %cst_17 = arith.constant 5.500000e-02 : f32
    %19 = vector.broadcast %cst_17 : f32 to vector<8x128xf32>
    %20 = arith.addf %18, %19 : vector<8x128xf32>
    %cst_18 = arith.constant 0.947867274 : f32
    %21 = vector.broadcast %cst_18 : f32 to vector<8x128xf32>
    %22 = arith.mulf %20, %21 : vector<8x128xf32>
    %23 = arith.mulf %22, %22 : vector<8x128xf32>
    %cst_19 = arith.constant 8.000000e-03 : f32
    %24 = vector.broadcast %cst_19 : f32 to vector<8x128xf32>
    %25 = arith.maximumf %23, %24 : vector<8x128xf32>
    %26 = tpu.bitcast %25 : vector<8x128xf32> -> vector<8x128xi32>
    %27 = arith.sitofp %26 : vector<8x128xi32> to vector<8x128xf32>
    %cst_20 = arith.constant 2.000000e-01 : f32
    %28 = vector.broadcast %cst_20 : f32 to vector<8x128xf32>
    %29 = arith.mulf %28, %27 : vector<8x128xf32>
    %cst_21 = arith.constant 1.27797043E+9 : f32
    %30 = vector.broadcast %cst_21 : f32 to vector<8x128xf32>
    %31 = arith.subf %30, %29 : vector<8x128xf32>
    %32 = arith.fptosi %31 : vector<8x128xf32> to vector<8x128xi32>
    %33 = tpu.bitcast %32 : vector<8x128xi32> -> vector<8x128xf32>
    %34 = arith.mulf %33, %33 : vector<8x128xf32>
    %35 = arith.mulf %34, %33 : vector<8x128xf32>
    %36 = arith.mulf %35, %33 : vector<8x128xf32>
    %37 = arith.mulf %36, %33 : vector<8x128xf32>
    %38 = arith.mulf %25, %37 : vector<8x128xf32>
    %cst_22 = arith.constant 2.000000e-01 : f32
    %39 = vector.broadcast %cst_22 : f32 to vector<8x128xf32>
    %40 = arith.mulf %39, %38 : vector<8x128xf32>
    %cst_23 = arith.constant 1.200000e+00 : f32
    %41 = vector.broadcast %cst_23 : f32 to vector<8x128xf32>
    %42 = arith.subf %41, %40 : vector<8x128xf32>
    %43 = arith.mulf %33, %42 : vector<8x128xf32>
    %44 = arith.mulf %43, %43 : vector<8x128xf32>
    %45 = arith.mulf %44, %43 : vector<8x128xf32>
    %46 = arith.mulf %45, %43 : vector<8x128xf32>
    %47 = arith.mulf %46, %43 : vector<8x128xf32>
    %48 = arith.mulf %25, %47 : vector<8x128xf32>
    %cst_24 = arith.constant 2.000000e-01 : f32
    %49 = vector.broadcast %cst_24 : f32 to vector<8x128xf32>
    %50 = arith.mulf %49, %48 : vector<8x128xf32>
    %cst_25 = arith.constant 1.200000e+00 : f32
    %51 = vector.broadcast %cst_25 : f32 to vector<8x128xf32>
    %52 = arith.subf %51, %50 : vector<8x128xf32>
    %53 = arith.mulf %43, %52 : vector<8x128xf32>
    %54 = arith.mulf %53, %53 : vector<8x128xf32>
    %55 = arith.mulf %54, %53 : vector<8x128xf32>
    %56 = arith.mulf %55, %53 : vector<8x128xf32>
    %57 = arith.mulf %56, %53 : vector<8x128xf32>
    %58 = arith.mulf %25, %57 : vector<8x128xf32>
    %cst_26 = arith.constant 2.000000e-01 : f32
    %59 = vector.broadcast %cst_26 : f32 to vector<8x128xf32>
    %60 = arith.mulf %59, %58 : vector<8x128xf32>
    %cst_27 = arith.constant 1.200000e+00 : f32
    %61 = vector.broadcast %cst_27 : f32 to vector<8x128xf32>
    %62 = arith.subf %61, %60 : vector<8x128xf32>
    %63 = arith.mulf %53, %62 : vector<8x128xf32>
    %64 = arith.mulf %63, %63 : vector<8x128xf32>
    %65 = arith.mulf %64, %63 : vector<8x128xf32>
    %66 = arith.mulf %65, %63 : vector<8x128xf32>
    %67 = arith.mulf %66, %63 : vector<8x128xf32>
    %68 = arith.mulf %25, %67 : vector<8x128xf32>
    %cst_28 = arith.constant 2.000000e-01 : f32
    %69 = vector.broadcast %cst_28 : f32 to vector<8x128xf32>
    %70 = arith.mulf %69, %68 : vector<8x128xf32>
    %cst_29 = arith.constant 1.200000e+00 : f32
    %71 = vector.broadcast %cst_29 : f32 to vector<8x128xf32>
    %72 = arith.subf %71, %70 : vector<8x128xf32>
    %73 = arith.mulf %63, %72 : vector<8x128xf32>
    %74 = arith.mulf %73, %73 : vector<8x128xf32>
    %75 = arith.mulf %25, %25 : vector<8x128xf32>
    %76 = arith.mulf %74, %74 : vector<8x128xf32>
    %77 = arith.mulf %75, %76 : vector<8x128xf32>
    %cst_30 = arith.constant 4.045000e-02 : f32
    %78 = vector.broadcast %cst_30 : f32 to vector<8x128xf32>
    %79 = arith.cmpf ogt, %18, %78 : vector<8x128xf32>
    %cst_31 = arith.constant 0.0773993805 : f32
    %80 = vector.broadcast %cst_31 : f32 to vector<8x128xf32>
    %81 = arith.mulf %18, %80 : vector<8x128xf32>
    %82 = arith.select %79, %77, %81 : vector<8x128xi1>, vector<8x128xf32>
    %cst_32 = arith.constant 1.000000e+00 : f32
    %83 = vector.broadcast %cst_32 : f32 to vector<8x128xf32>
    %84 = arith.addf %6, %83 : vector<8x128xf32>
    %cst_33 = arith.constant 5.000000e-01 : f32
    %85 = vector.broadcast %cst_33 : f32 to vector<8x128xf32>
    %86 = arith.mulf %84, %85 : vector<8x128xf32>
    %cst_34 = arith.constant 5.500000e-02 : f32
    %87 = vector.broadcast %cst_34 : f32 to vector<8x128xf32>
    %88 = arith.addf %86, %87 : vector<8x128xf32>
    %cst_35 = arith.constant 0.947867274 : f32
    %89 = vector.broadcast %cst_35 : f32 to vector<8x128xf32>
    %90 = arith.mulf %88, %89 : vector<8x128xf32>
    %91 = arith.mulf %90, %90 : vector<8x128xf32>
    %cst_36 = arith.constant 8.000000e-03 : f32
    %92 = vector.broadcast %cst_36 : f32 to vector<8x128xf32>
    %93 = arith.maximumf %91, %92 : vector<8x128xf32>
    %94 = tpu.bitcast %93 : vector<8x128xf32> -> vector<8x128xi32>
    %95 = arith.sitofp %94 : vector<8x128xi32> to vector<8x128xf32>
    %cst_37 = arith.constant 2.000000e-01 : f32
    %96 = vector.broadcast %cst_37 : f32 to vector<8x128xf32>
    %97 = arith.mulf %96, %95 : vector<8x128xf32>
    %cst_38 = arith.constant 1.27797043E+9 : f32
    %98 = vector.broadcast %cst_38 : f32 to vector<8x128xf32>
    %99 = arith.subf %98, %97 : vector<8x128xf32>
    %100 = arith.fptosi %99 : vector<8x128xf32> to vector<8x128xi32>
    %101 = tpu.bitcast %100 : vector<8x128xi32> -> vector<8x128xf32>
    %102 = arith.mulf %101, %101 : vector<8x128xf32>
    %103 = arith.mulf %102, %101 : vector<8x128xf32>
    %104 = arith.mulf %103, %101 : vector<8x128xf32>
    %105 = arith.mulf %104, %101 : vector<8x128xf32>
    %106 = arith.mulf %93, %105 : vector<8x128xf32>
    %cst_39 = arith.constant 2.000000e-01 : f32
    %107 = vector.broadcast %cst_39 : f32 to vector<8x128xf32>
    %108 = arith.mulf %107, %106 : vector<8x128xf32>
    %cst_40 = arith.constant 1.200000e+00 : f32
    %109 = vector.broadcast %cst_40 : f32 to vector<8x128xf32>
    %110 = arith.subf %109, %108 : vector<8x128xf32>
    %111 = arith.mulf %101, %110 : vector<8x128xf32>
    %112 = arith.mulf %111, %111 : vector<8x128xf32>
    %113 = arith.mulf %112, %111 : vector<8x128xf32>
    %114 = arith.mulf %113, %111 : vector<8x128xf32>
    %115 = arith.mulf %114, %111 : vector<8x128xf32>
    %116 = arith.mulf %93, %115 : vector<8x128xf32>
    %cst_41 = arith.constant 2.000000e-01 : f32
    %117 = vector.broadcast %cst_41 : f32 to vector<8x128xf32>
    %118 = arith.mulf %117, %116 : vector<8x128xf32>
    %cst_42 = arith.constant 1.200000e+00 : f32
    %119 = vector.broadcast %cst_42 : f32 to vector<8x128xf32>
    %120 = arith.subf %119, %118 : vector<8x128xf32>
    %121 = arith.mulf %111, %120 : vector<8x128xf32>
    %122 = arith.mulf %121, %121 : vector<8x128xf32>
    %123 = arith.mulf %122, %121 : vector<8x128xf32>
    %124 = arith.mulf %123, %121 : vector<8x128xf32>
    %125 = arith.mulf %124, %121 : vector<8x128xf32>
    %126 = arith.mulf %93, %125 : vector<8x128xf32>
    %cst_43 = arith.constant 2.000000e-01 : f32
    %127 = vector.broadcast %cst_43 : f32 to vector<8x128xf32>
    %128 = arith.mulf %127, %126 : vector<8x128xf32>
    %cst_44 = arith.constant 1.200000e+00 : f32
    %129 = vector.broadcast %cst_44 : f32 to vector<8x128xf32>
    %130 = arith.subf %129, %128 : vector<8x128xf32>
    %131 = arith.mulf %121, %130 : vector<8x128xf32>
    %132 = arith.mulf %131, %131 : vector<8x128xf32>
    %133 = arith.mulf %132, %131 : vector<8x128xf32>
    %134 = arith.mulf %133, %131 : vector<8x128xf32>
    %135 = arith.mulf %134, %131 : vector<8x128xf32>
    %136 = arith.mulf %93, %135 : vector<8x128xf32>
    %cst_45 = arith.constant 2.000000e-01 : f32
    %137 = vector.broadcast %cst_45 : f32 to vector<8x128xf32>
    %138 = arith.mulf %137, %136 : vector<8x128xf32>
    %cst_46 = arith.constant 1.200000e+00 : f32
    %139 = vector.broadcast %cst_46 : f32 to vector<8x128xf32>
    %140 = arith.subf %139, %138 : vector<8x128xf32>
    %141 = arith.mulf %131, %140 : vector<8x128xf32>
    %142 = arith.mulf %141, %141 : vector<8x128xf32>
    %143 = arith.mulf %93, %93 : vector<8x128xf32>
    %144 = arith.mulf %142, %142 : vector<8x128xf32>
    %145 = arith.mulf %143, %144 : vector<8x128xf32>
    %cst_47 = arith.constant 4.045000e-02 : f32
    %146 = vector.broadcast %cst_47 : f32 to vector<8x128xf32>
    %147 = arith.cmpf ogt, %86, %146 : vector<8x128xf32>
    %cst_48 = arith.constant 0.0773993805 : f32
    %148 = vector.broadcast %cst_48 : f32 to vector<8x128xf32>
    %149 = arith.mulf %86, %148 : vector<8x128xf32>
    %150 = arith.select %147, %145, %149 : vector<8x128xi1>, vector<8x128xf32>
    %cst_49 = arith.constant 1.000000e+00 : f32
    %151 = vector.broadcast %cst_49 : f32 to vector<8x128xf32>
    %152 = arith.addf %8, %151 : vector<8x128xf32>
    %cst_50 = arith.constant 5.000000e-01 : f32
    %153 = vector.broadcast %cst_50 : f32 to vector<8x128xf32>
    %154 = arith.mulf %152, %153 : vector<8x128xf32>
    %cst_51 = arith.constant 5.500000e-02 : f32
    %155 = vector.broadcast %cst_51 : f32 to vector<8x128xf32>
    %156 = arith.addf %154, %155 : vector<8x128xf32>
    %cst_52 = arith.constant 0.947867274 : f32
    %157 = vector.broadcast %cst_52 : f32 to vector<8x128xf32>
    %158 = arith.mulf %156, %157 : vector<8x128xf32>
    %159 = arith.mulf %158, %158 : vector<8x128xf32>
    %cst_53 = arith.constant 8.000000e-03 : f32
    %160 = vector.broadcast %cst_53 : f32 to vector<8x128xf32>
    %161 = arith.maximumf %159, %160 : vector<8x128xf32>
    %162 = tpu.bitcast %161 : vector<8x128xf32> -> vector<8x128xi32>
    %163 = arith.sitofp %162 : vector<8x128xi32> to vector<8x128xf32>
    %cst_54 = arith.constant 2.000000e-01 : f32
    %164 = vector.broadcast %cst_54 : f32 to vector<8x128xf32>
    %165 = arith.mulf %164, %163 : vector<8x128xf32>
    %cst_55 = arith.constant 1.27797043E+9 : f32
    %166 = vector.broadcast %cst_55 : f32 to vector<8x128xf32>
    %167 = arith.subf %166, %165 : vector<8x128xf32>
    %168 = arith.fptosi %167 : vector<8x128xf32> to vector<8x128xi32>
    %169 = tpu.bitcast %168 : vector<8x128xi32> -> vector<8x128xf32>
    %170 = arith.mulf %169, %169 : vector<8x128xf32>
    %171 = arith.mulf %170, %169 : vector<8x128xf32>
    %172 = arith.mulf %171, %169 : vector<8x128xf32>
    %173 = arith.mulf %172, %169 : vector<8x128xf32>
    %174 = arith.mulf %161, %173 : vector<8x128xf32>
    %cst_56 = arith.constant 2.000000e-01 : f32
    %175 = vector.broadcast %cst_56 : f32 to vector<8x128xf32>
    %176 = arith.mulf %175, %174 : vector<8x128xf32>
    %cst_57 = arith.constant 1.200000e+00 : f32
    %177 = vector.broadcast %cst_57 : f32 to vector<8x128xf32>
    %178 = arith.subf %177, %176 : vector<8x128xf32>
    %179 = arith.mulf %169, %178 : vector<8x128xf32>
    %180 = arith.mulf %179, %179 : vector<8x128xf32>
    %181 = arith.mulf %180, %179 : vector<8x128xf32>
    %182 = arith.mulf %181, %179 : vector<8x128xf32>
    %183 = arith.mulf %182, %179 : vector<8x128xf32>
    %184 = arith.mulf %161, %183 : vector<8x128xf32>
    %cst_58 = arith.constant 2.000000e-01 : f32
    %185 = vector.broadcast %cst_58 : f32 to vector<8x128xf32>
    %186 = arith.mulf %185, %184 : vector<8x128xf32>
    %cst_59 = arith.constant 1.200000e+00 : f32
    %187 = vector.broadcast %cst_59 : f32 to vector<8x128xf32>
    %188 = arith.subf %187, %186 : vector<8x128xf32>
    %189 = arith.mulf %179, %188 : vector<8x128xf32>
    %190 = arith.mulf %189, %189 : vector<8x128xf32>
    %191 = arith.mulf %190, %189 : vector<8x128xf32>
    %192 = arith.mulf %191, %189 : vector<8x128xf32>
    %193 = arith.mulf %192, %189 : vector<8x128xf32>
    %194 = arith.mulf %161, %193 : vector<8x128xf32>
    %cst_60 = arith.constant 2.000000e-01 : f32
    %195 = vector.broadcast %cst_60 : f32 to vector<8x128xf32>
    %196 = arith.mulf %195, %194 : vector<8x128xf32>
    %cst_61 = arith.constant 1.200000e+00 : f32
    %197 = vector.broadcast %cst_61 : f32 to vector<8x128xf32>
    %198 = arith.subf %197, %196 : vector<8x128xf32>
    %199 = arith.mulf %189, %198 : vector<8x128xf32>
    %200 = arith.mulf %199, %199 : vector<8x128xf32>
    %201 = arith.mulf %200, %199 : vector<8x128xf32>
    %202 = arith.mulf %201, %199 : vector<8x128xf32>
    %203 = arith.mulf %202, %199 : vector<8x128xf32>
    %204 = arith.mulf %161, %203 : vector<8x128xf32>
    %cst_62 = arith.constant 2.000000e-01 : f32
    %205 = vector.broadcast %cst_62 : f32 to vector<8x128xf32>
    %206 = arith.mulf %205, %204 : vector<8x128xf32>
    %cst_63 = arith.constant 1.200000e+00 : f32
    %207 = vector.broadcast %cst_63 : f32 to vector<8x128xf32>
    %208 = arith.subf %207, %206 : vector<8x128xf32>
    %209 = arith.mulf %199, %208 : vector<8x128xf32>
    %210 = arith.mulf %209, %209 : vector<8x128xf32>
    %211 = arith.mulf %161, %161 : vector<8x128xf32>
    %212 = arith.mulf %210, %210 : vector<8x128xf32>
    %213 = arith.mulf %211, %212 : vector<8x128xf32>
    %cst_64 = arith.constant 4.045000e-02 : f32
    %214 = vector.broadcast %cst_64 : f32 to vector<8x128xf32>
    %215 = arith.cmpf ogt, %154, %214 : vector<8x128xf32>
    %cst_65 = arith.constant 0.0773993805 : f32
    %216 = vector.broadcast %cst_65 : f32 to vector<8x128xf32>
    %217 = arith.mulf %154, %216 : vector<8x128xf32>
    %218 = arith.select %215, %213, %217 : vector<8x128xi1>, vector<8x128xf32>
    %cst_66 = arith.constant 4.124530e-01 : f32
    %219 = vector.broadcast %cst_66 : f32 to vector<8x128xf32>
    %220 = arith.mulf %219, %82 : vector<8x128xf32>
    %cst_67 = arith.constant 3.575800e-01 : f32
    %221 = vector.broadcast %cst_67 : f32 to vector<8x128xf32>
    %222 = arith.mulf %221, %150 : vector<8x128xf32>
    %223 = arith.addf %220, %222 : vector<8x128xf32>
    %cst_68 = arith.constant 1.804230e-01 : f32
    %224 = vector.broadcast %cst_68 : f32 to vector<8x128xf32>
    %225 = arith.mulf %224, %218 : vector<8x128xf32>
    %226 = arith.addf %223, %225 : vector<8x128xf32>
    %cst_69 = arith.constant 2.126710e-01 : f32
    %227 = vector.broadcast %cst_69 : f32 to vector<8x128xf32>
    %228 = arith.mulf %227, %82 : vector<8x128xf32>
    %cst_70 = arith.constant 7.151600e-01 : f32
    %229 = vector.broadcast %cst_70 : f32 to vector<8x128xf32>
    %230 = arith.mulf %229, %150 : vector<8x128xf32>
    %231 = arith.addf %228, %230 : vector<8x128xf32>
    %cst_71 = arith.constant 7.216900e-02 : f32
    %232 = vector.broadcast %cst_71 : f32 to vector<8x128xf32>
    %233 = arith.mulf %232, %218 : vector<8x128xf32>
    %234 = arith.addf %231, %233 : vector<8x128xf32>
    %cst_72 = arith.constant 1.933400e-02 : f32
    %235 = vector.broadcast %cst_72 : f32 to vector<8x128xf32>
    %236 = arith.mulf %235, %82 : vector<8x128xf32>
    %cst_73 = arith.constant 1.191930e-01 : f32
    %237 = vector.broadcast %cst_73 : f32 to vector<8x128xf32>
    %238 = arith.mulf %237, %150 : vector<8x128xf32>
    %239 = arith.addf %236, %238 : vector<8x128xf32>
    %cst_74 = arith.constant 9.502270e-01 : f32
    %240 = vector.broadcast %cst_74 : f32 to vector<8x128xf32>
    %241 = arith.mulf %240, %218 : vector<8x128xf32>
    %242 = arith.addf %239, %241 : vector<8x128xf32>
    %cst_75 = arith.constant 1.05211103 : f32
    %243 = vector.broadcast %cst_75 : f32 to vector<8x128xf32>
    %244 = arith.mulf %226, %243 : vector<8x128xf32>
    %cst_76 = arith.constant 8.856000e-03 : f32
    %245 = vector.broadcast %cst_76 : f32 to vector<8x128xf32>
    %246 = arith.maximumf %244, %245 : vector<8x128xf32>
    %247 = tpu.bitcast %246 : vector<8x128xf32> -> vector<8x128xi32>
    %248 = arith.sitofp %247 : vector<8x128xi32> to vector<8x128xf32>
    %cst_77 = arith.constant 0.333333343 : f32
    %249 = vector.broadcast %cst_77 : f32 to vector<8x128xf32>
    %250 = arith.mulf %249, %248 : vector<8x128xf32>
    %cst_78 = arith.constant 1.4199671E+9 : f32
    %251 = vector.broadcast %cst_78 : f32 to vector<8x128xf32>
    %252 = arith.subf %251, %250 : vector<8x128xf32>
    %253 = arith.fptosi %252 : vector<8x128xf32> to vector<8x128xi32>
    %254 = tpu.bitcast %253 : vector<8x128xi32> -> vector<8x128xf32>
    %255 = arith.mulf %254, %254 : vector<8x128xf32>
    %256 = arith.mulf %255, %254 : vector<8x128xf32>
    %257 = arith.mulf %246, %256 : vector<8x128xf32>
    %cst_79 = arith.constant 0.333333343 : f32
    %258 = vector.broadcast %cst_79 : f32 to vector<8x128xf32>
    %259 = arith.mulf %258, %257 : vector<8x128xf32>
    %cst_80 = arith.constant 1.33333337 : f32
    %260 = vector.broadcast %cst_80 : f32 to vector<8x128xf32>
    %261 = arith.subf %260, %259 : vector<8x128xf32>
    %262 = arith.mulf %254, %261 : vector<8x128xf32>
    %263 = arith.mulf %262, %262 : vector<8x128xf32>
    %264 = arith.mulf %263, %262 : vector<8x128xf32>
    %265 = arith.mulf %246, %264 : vector<8x128xf32>
    %cst_81 = arith.constant 0.333333343 : f32
    %266 = vector.broadcast %cst_81 : f32 to vector<8x128xf32>
    %267 = arith.mulf %266, %265 : vector<8x128xf32>
    %cst_82 = arith.constant 1.33333337 : f32
    %268 = vector.broadcast %cst_82 : f32 to vector<8x128xf32>
    %269 = arith.subf %268, %267 : vector<8x128xf32>
    %270 = arith.mulf %262, %269 : vector<8x128xf32>
    %271 = arith.mulf %270, %270 : vector<8x128xf32>
    %272 = arith.mulf %271, %270 : vector<8x128xf32>
    %273 = arith.mulf %246, %272 : vector<8x128xf32>
    %cst_83 = arith.constant 0.333333343 : f32
    %274 = vector.broadcast %cst_83 : f32 to vector<8x128xf32>
    %275 = arith.mulf %274, %273 : vector<8x128xf32>
    %cst_84 = arith.constant 1.33333337 : f32
    %276 = vector.broadcast %cst_84 : f32 to vector<8x128xf32>
    %277 = arith.subf %276, %275 : vector<8x128xf32>
    %278 = arith.mulf %270, %277 : vector<8x128xf32>
    %279 = arith.mulf %278, %278 : vector<8x128xf32>
    %280 = arith.mulf %246, %279 : vector<8x128xf32>
    %cst_85 = arith.constant 8.856000e-03 : f32
    %281 = vector.broadcast %cst_85 : f32 to vector<8x128xf32>
    %282 = arith.cmpf ogt, %244, %281 : vector<8x128xf32>
    %cst_86 = arith.constant 7.787000e+00 : f32
    %283 = vector.broadcast %cst_86 : f32 to vector<8x128xf32>
    %284 = arith.mulf %283, %244 : vector<8x128xf32>
    %cst_87 = arith.constant 0.137931034 : f32
    %285 = vector.broadcast %cst_87 : f32 to vector<8x128xf32>
    %286 = arith.addf %284, %285 : vector<8x128xf32>
    %287 = arith.select %282, %280, %286 : vector<8x128xi1>, vector<8x128xf32>
    %cst_88 = arith.constant 1.000000e+00 : f32
    %288 = vector.broadcast %cst_88 : f32 to vector<8x128xf32>
    %289 = arith.mulf %234, %288 : vector<8x128xf32>
    %cst_89 = arith.constant 8.856000e-03 : f32
    %290 = vector.broadcast %cst_89 : f32 to vector<8x128xf32>
    %291 = arith.maximumf %289, %290 : vector<8x128xf32>
    %292 = tpu.bitcast %291 : vector<8x128xf32> -> vector<8x128xi32>
    %293 = arith.sitofp %292 : vector<8x128xi32> to vector<8x128xf32>
    %cst_90 = arith.constant 0.333333343 : f32
    %294 = vector.broadcast %cst_90 : f32 to vector<8x128xf32>
    %295 = arith.mulf %294, %293 : vector<8x128xf32>
    %cst_91 = arith.constant 1.4199671E+9 : f32
    %296 = vector.broadcast %cst_91 : f32 to vector<8x128xf32>
    %297 = arith.subf %296, %295 : vector<8x128xf32>
    %298 = arith.fptosi %297 : vector<8x128xf32> to vector<8x128xi32>
    %299 = tpu.bitcast %298 : vector<8x128xi32> -> vector<8x128xf32>
    %300 = arith.mulf %299, %299 : vector<8x128xf32>
    %301 = arith.mulf %300, %299 : vector<8x128xf32>
    %302 = arith.mulf %291, %301 : vector<8x128xf32>
    %cst_92 = arith.constant 0.333333343 : f32
    %303 = vector.broadcast %cst_92 : f32 to vector<8x128xf32>
    %304 = arith.mulf %303, %302 : vector<8x128xf32>
    %cst_93 = arith.constant 1.33333337 : f32
    %305 = vector.broadcast %cst_93 : f32 to vector<8x128xf32>
    %306 = arith.subf %305, %304 : vector<8x128xf32>
    %307 = arith.mulf %299, %306 : vector<8x128xf32>
    %308 = arith.mulf %307, %307 : vector<8x128xf32>
    %309 = arith.mulf %308, %307 : vector<8x128xf32>
    %310 = arith.mulf %291, %309 : vector<8x128xf32>
    %cst_94 = arith.constant 0.333333343 : f32
    %311 = vector.broadcast %cst_94 : f32 to vector<8x128xf32>
    %312 = arith.mulf %311, %310 : vector<8x128xf32>
    %cst_95 = arith.constant 1.33333337 : f32
    %313 = vector.broadcast %cst_95 : f32 to vector<8x128xf32>
    %314 = arith.subf %313, %312 : vector<8x128xf32>
    %315 = arith.mulf %307, %314 : vector<8x128xf32>
    %316 = arith.mulf %315, %315 : vector<8x128xf32>
    %317 = arith.mulf %316, %315 : vector<8x128xf32>
    %318 = arith.mulf %291, %317 : vector<8x128xf32>
    %cst_96 = arith.constant 0.333333343 : f32
    %319 = vector.broadcast %cst_96 : f32 to vector<8x128xf32>
    %320 = arith.mulf %319, %318 : vector<8x128xf32>
    %cst_97 = arith.constant 1.33333337 : f32
    %321 = vector.broadcast %cst_97 : f32 to vector<8x128xf32>
    %322 = arith.subf %321, %320 : vector<8x128xf32>
    %323 = arith.mulf %315, %322 : vector<8x128xf32>
    %324 = arith.mulf %323, %323 : vector<8x128xf32>
    %325 = arith.mulf %291, %324 : vector<8x128xf32>
    %cst_98 = arith.constant 8.856000e-03 : f32
    %326 = vector.broadcast %cst_98 : f32 to vector<8x128xf32>
    %327 = arith.cmpf ogt, %289, %326 : vector<8x128xf32>
    %cst_99 = arith.constant 7.787000e+00 : f32
    %328 = vector.broadcast %cst_99 : f32 to vector<8x128xf32>
    %329 = arith.mulf %328, %289 : vector<8x128xf32>
    %cst_100 = arith.constant 0.137931034 : f32
    %330 = vector.broadcast %cst_100 : f32 to vector<8x128xf32>
    %331 = arith.addf %329, %330 : vector<8x128xf32>
    %332 = arith.select %327, %325, %331 : vector<8x128xi1>, vector<8x128xf32>
    %cst_101 = arith.constant 0.918417036 : f32
    %333 = vector.broadcast %cst_101 : f32 to vector<8x128xf32>
    %334 = arith.mulf %242, %333 : vector<8x128xf32>
    %cst_102 = arith.constant 8.856000e-03 : f32
    %335 = vector.broadcast %cst_102 : f32 to vector<8x128xf32>
    %336 = arith.maximumf %334, %335 : vector<8x128xf32>
    %337 = tpu.bitcast %336 : vector<8x128xf32> -> vector<8x128xi32>
    %338 = arith.sitofp %337 : vector<8x128xi32> to vector<8x128xf32>
    %cst_103 = arith.constant 0.333333343 : f32
    %339 = vector.broadcast %cst_103 : f32 to vector<8x128xf32>
    %340 = arith.mulf %339, %338 : vector<8x128xf32>
    %cst_104 = arith.constant 1.4199671E+9 : f32
    %341 = vector.broadcast %cst_104 : f32 to vector<8x128xf32>
    %342 = arith.subf %341, %340 : vector<8x128xf32>
    %343 = arith.fptosi %342 : vector<8x128xf32> to vector<8x128xi32>
    %344 = tpu.bitcast %343 : vector<8x128xi32> -> vector<8x128xf32>
    %345 = arith.mulf %344, %344 : vector<8x128xf32>
    %346 = arith.mulf %345, %344 : vector<8x128xf32>
    %347 = arith.mulf %336, %346 : vector<8x128xf32>
    %cst_105 = arith.constant 0.333333343 : f32
    %348 = vector.broadcast %cst_105 : f32 to vector<8x128xf32>
    %349 = arith.mulf %348, %347 : vector<8x128xf32>
    %cst_106 = arith.constant 1.33333337 : f32
    %350 = vector.broadcast %cst_106 : f32 to vector<8x128xf32>
    %351 = arith.subf %350, %349 : vector<8x128xf32>
    %352 = arith.mulf %344, %351 : vector<8x128xf32>
    %353 = arith.mulf %352, %352 : vector<8x128xf32>
    %354 = arith.mulf %353, %352 : vector<8x128xf32>
    %355 = arith.mulf %336, %354 : vector<8x128xf32>
    %cst_107 = arith.constant 0.333333343 : f32
    %356 = vector.broadcast %cst_107 : f32 to vector<8x128xf32>
    %357 = arith.mulf %356, %355 : vector<8x128xf32>
    %cst_108 = arith.constant 1.33333337 : f32
    %358 = vector.broadcast %cst_108 : f32 to vector<8x128xf32>
    %359 = arith.subf %358, %357 : vector<8x128xf32>
    %360 = arith.mulf %352, %359 : vector<8x128xf32>
    %361 = arith.mulf %360, %360 : vector<8x128xf32>
    %362 = arith.mulf %361, %360 : vector<8x128xf32>
    %363 = arith.mulf %336, %362 : vector<8x128xf32>
    %cst_109 = arith.constant 0.333333343 : f32
    %364 = vector.broadcast %cst_109 : f32 to vector<8x128xf32>
    %365 = arith.mulf %364, %363 : vector<8x128xf32>
    %cst_110 = arith.constant 1.33333337 : f32
    %366 = vector.broadcast %cst_110 : f32 to vector<8x128xf32>
    %367 = arith.subf %366, %365 : vector<8x128xf32>
    %368 = arith.mulf %360, %367 : vector<8x128xf32>
    %369 = arith.mulf %368, %368 : vector<8x128xf32>
    %370 = arith.mulf %336, %369 : vector<8x128xf32>
    %cst_111 = arith.constant 8.856000e-03 : f32
    %371 = vector.broadcast %cst_111 : f32 to vector<8x128xf32>
    %372 = arith.cmpf ogt, %334, %371 : vector<8x128xf32>
    %cst_112 = arith.constant 7.787000e+00 : f32
    %373 = vector.broadcast %cst_112 : f32 to vector<8x128xf32>
    %374 = arith.mulf %373, %334 : vector<8x128xf32>
    %cst_113 = arith.constant 0.137931034 : f32
    %375 = vector.broadcast %cst_113 : f32 to vector<8x128xf32>
    %376 = arith.addf %374, %375 : vector<8x128xf32>
    %377 = arith.select %372, %370, %376 : vector<8x128xi1>, vector<8x128xf32>
    %378 = arith.subf %287, %332 : vector<8x128xf32>
    %cst_114 = arith.constant 5.000000e+02 : f32
    %379 = vector.broadcast %cst_114 : f32 to vector<8x128xf32>
    %380 = arith.mulf %379, %378 : vector<8x128xf32>
    %381 = arith.subf %332, %377 : vector<8x128xf32>
    %cst_115 = arith.constant 2.000000e+02 : f32
    %382 = vector.broadcast %cst_115 : f32 to vector<8x128xf32>
    %383 = arith.mulf %382, %381 : vector<8x128xf32>
    %384 = math.atan2 %383, %380 : vector<8x128xf32>
    %cst_116 = arith.constant 0.000000e+00 : f32
    %385 = vector.broadcast %cst_116 : f32 to vector<8x128xf32>
    %386 = arith.cmpf olt, %384, %385 : vector<8x128xf32>
    %cst_117 = arith.constant 6.28318548 : f32
    %387 = vector.broadcast %cst_117 : f32 to vector<8x128xf32>
    %388 = arith.addf %384, %387 : vector<8x128xf32>
    %389 = arith.select %386, %388, %384 : vector<8x128xi1>, vector<8x128xf32>
    %cst_118 = arith.constant 1.000000e+00 : f32
    %390 = vector.broadcast %cst_118 : f32 to vector<8x128xf32>
    %391 = arith.addf %10, %390 : vector<8x128xf32>
    %cst_119 = arith.constant 5.000000e-01 : f32
    %392 = vector.broadcast %cst_119 : f32 to vector<8x128xf32>
    %393 = arith.mulf %391, %392 : vector<8x128xf32>
    %cst_120 = arith.constant 5.500000e-02 : f32
    %394 = vector.broadcast %cst_120 : f32 to vector<8x128xf32>
    %395 = arith.addf %393, %394 : vector<8x128xf32>
    %cst_121 = arith.constant 0.947867274 : f32
    %396 = vector.broadcast %cst_121 : f32 to vector<8x128xf32>
    %397 = arith.mulf %395, %396 : vector<8x128xf32>
    %398 = arith.mulf %397, %397 : vector<8x128xf32>
    %cst_122 = arith.constant 8.000000e-03 : f32
    %399 = vector.broadcast %cst_122 : f32 to vector<8x128xf32>
    %400 = arith.maximumf %398, %399 : vector<8x128xf32>
    %401 = tpu.bitcast %400 : vector<8x128xf32> -> vector<8x128xi32>
    %402 = arith.sitofp %401 : vector<8x128xi32> to vector<8x128xf32>
    %cst_123 = arith.constant 2.000000e-01 : f32
    %403 = vector.broadcast %cst_123 : f32 to vector<8x128xf32>
    %404 = arith.mulf %403, %402 : vector<8x128xf32>
    %cst_124 = arith.constant 1.27797043E+9 : f32
    %405 = vector.broadcast %cst_124 : f32 to vector<8x128xf32>
    %406 = arith.subf %405, %404 : vector<8x128xf32>
    %407 = arith.fptosi %406 : vector<8x128xf32> to vector<8x128xi32>
    %408 = tpu.bitcast %407 : vector<8x128xi32> -> vector<8x128xf32>
    %409 = arith.mulf %408, %408 : vector<8x128xf32>
    %410 = arith.mulf %409, %408 : vector<8x128xf32>
    %411 = arith.mulf %410, %408 : vector<8x128xf32>
    %412 = arith.mulf %411, %408 : vector<8x128xf32>
    %413 = arith.mulf %400, %412 : vector<8x128xf32>
    %cst_125 = arith.constant 2.000000e-01 : f32
    %414 = vector.broadcast %cst_125 : f32 to vector<8x128xf32>
    %415 = arith.mulf %414, %413 : vector<8x128xf32>
    %cst_126 = arith.constant 1.200000e+00 : f32
    %416 = vector.broadcast %cst_126 : f32 to vector<8x128xf32>
    %417 = arith.subf %416, %415 : vector<8x128xf32>
    %418 = arith.mulf %408, %417 : vector<8x128xf32>
    %419 = arith.mulf %418, %418 : vector<8x128xf32>
    %420 = arith.mulf %419, %418 : vector<8x128xf32>
    %421 = arith.mulf %420, %418 : vector<8x128xf32>
    %422 = arith.mulf %421, %418 : vector<8x128xf32>
    %423 = arith.mulf %400, %422 : vector<8x128xf32>
    %cst_127 = arith.constant 2.000000e-01 : f32
    %424 = vector.broadcast %cst_127 : f32 to vector<8x128xf32>
    %425 = arith.mulf %424, %423 : vector<8x128xf32>
    %cst_128 = arith.constant 1.200000e+00 : f32
    %426 = vector.broadcast %cst_128 : f32 to vector<8x128xf32>
    %427 = arith.subf %426, %425 : vector<8x128xf32>
    %428 = arith.mulf %418, %427 : vector<8x128xf32>
    %429 = arith.mulf %428, %428 : vector<8x128xf32>
    %430 = arith.mulf %429, %428 : vector<8x128xf32>
    %431 = arith.mulf %430, %428 : vector<8x128xf32>
    %432 = arith.mulf %431, %428 : vector<8x128xf32>
    %433 = arith.mulf %400, %432 : vector<8x128xf32>
    %cst_129 = arith.constant 2.000000e-01 : f32
    %434 = vector.broadcast %cst_129 : f32 to vector<8x128xf32>
    %435 = arith.mulf %434, %433 : vector<8x128xf32>
    %cst_130 = arith.constant 1.200000e+00 : f32
    %436 = vector.broadcast %cst_130 : f32 to vector<8x128xf32>
    %437 = arith.subf %436, %435 : vector<8x128xf32>
    %438 = arith.mulf %428, %437 : vector<8x128xf32>
    %439 = arith.mulf %438, %438 : vector<8x128xf32>
    %440 = arith.mulf %439, %438 : vector<8x128xf32>
    %441 = arith.mulf %440, %438 : vector<8x128xf32>
    %442 = arith.mulf %441, %438 : vector<8x128xf32>
    %443 = arith.mulf %400, %442 : vector<8x128xf32>
    %cst_131 = arith.constant 2.000000e-01 : f32
    %444 = vector.broadcast %cst_131 : f32 to vector<8x128xf32>
    %445 = arith.mulf %444, %443 : vector<8x128xf32>
    %cst_132 = arith.constant 1.200000e+00 : f32
    %446 = vector.broadcast %cst_132 : f32 to vector<8x128xf32>
    %447 = arith.subf %446, %445 : vector<8x128xf32>
    %448 = arith.mulf %438, %447 : vector<8x128xf32>
    %449 = arith.mulf %448, %448 : vector<8x128xf32>
    %450 = arith.mulf %400, %400 : vector<8x128xf32>
    %451 = arith.mulf %449, %449 : vector<8x128xf32>
    %452 = arith.mulf %450, %451 : vector<8x128xf32>
    %cst_133 = arith.constant 4.045000e-02 : f32
    %453 = vector.broadcast %cst_133 : f32 to vector<8x128xf32>
    %454 = arith.cmpf ogt, %393, %453 : vector<8x128xf32>
    %cst_134 = arith.constant 0.0773993805 : f32
    %455 = vector.broadcast %cst_134 : f32 to vector<8x128xf32>
    %456 = arith.mulf %393, %455 : vector<8x128xf32>
    %457 = arith.select %454, %452, %456 : vector<8x128xi1>, vector<8x128xf32>
    %cst_135 = arith.constant 1.000000e+00 : f32
    %458 = vector.broadcast %cst_135 : f32 to vector<8x128xf32>
    %459 = arith.addf %12, %458 : vector<8x128xf32>
    %cst_136 = arith.constant 5.000000e-01 : f32
    %460 = vector.broadcast %cst_136 : f32 to vector<8x128xf32>
    %461 = arith.mulf %459, %460 : vector<8x128xf32>
    %cst_137 = arith.constant 5.500000e-02 : f32
    %462 = vector.broadcast %cst_137 : f32 to vector<8x128xf32>
    %463 = arith.addf %461, %462 : vector<8x128xf32>
    %cst_138 = arith.constant 0.947867274 : f32
    %464 = vector.broadcast %cst_138 : f32 to vector<8x128xf32>
    %465 = arith.mulf %463, %464 : vector<8x128xf32>
    %466 = arith.mulf %465, %465 : vector<8x128xf32>
    %cst_139 = arith.constant 8.000000e-03 : f32
    %467 = vector.broadcast %cst_139 : f32 to vector<8x128xf32>
    %468 = arith.maximumf %466, %467 : vector<8x128xf32>
    %469 = tpu.bitcast %468 : vector<8x128xf32> -> vector<8x128xi32>
    %470 = arith.sitofp %469 : vector<8x128xi32> to vector<8x128xf32>
    %cst_140 = arith.constant 2.000000e-01 : f32
    %471 = vector.broadcast %cst_140 : f32 to vector<8x128xf32>
    %472 = arith.mulf %471, %470 : vector<8x128xf32>
    %cst_141 = arith.constant 1.27797043E+9 : f32
    %473 = vector.broadcast %cst_141 : f32 to vector<8x128xf32>
    %474 = arith.subf %473, %472 : vector<8x128xf32>
    %475 = arith.fptosi %474 : vector<8x128xf32> to vector<8x128xi32>
    %476 = tpu.bitcast %475 : vector<8x128xi32> -> vector<8x128xf32>
    %477 = arith.mulf %476, %476 : vector<8x128xf32>
    %478 = arith.mulf %477, %476 : vector<8x128xf32>
    %479 = arith.mulf %478, %476 : vector<8x128xf32>
    %480 = arith.mulf %479, %476 : vector<8x128xf32>
    %481 = arith.mulf %468, %480 : vector<8x128xf32>
    %cst_142 = arith.constant 2.000000e-01 : f32
    %482 = vector.broadcast %cst_142 : f32 to vector<8x128xf32>
    %483 = arith.mulf %482, %481 : vector<8x128xf32>
    %cst_143 = arith.constant 1.200000e+00 : f32
    %484 = vector.broadcast %cst_143 : f32 to vector<8x128xf32>
    %485 = arith.subf %484, %483 : vector<8x128xf32>
    %486 = arith.mulf %476, %485 : vector<8x128xf32>
    %487 = arith.mulf %486, %486 : vector<8x128xf32>
    %488 = arith.mulf %487, %486 : vector<8x128xf32>
    %489 = arith.mulf %488, %486 : vector<8x128xf32>
    %490 = arith.mulf %489, %486 : vector<8x128xf32>
    %491 = arith.mulf %468, %490 : vector<8x128xf32>
    %cst_144 = arith.constant 2.000000e-01 : f32
    %492 = vector.broadcast %cst_144 : f32 to vector<8x128xf32>
    %493 = arith.mulf %492, %491 : vector<8x128xf32>
    %cst_145 = arith.constant 1.200000e+00 : f32
    %494 = vector.broadcast %cst_145 : f32 to vector<8x128xf32>
    %495 = arith.subf %494, %493 : vector<8x128xf32>
    %496 = arith.mulf %486, %495 : vector<8x128xf32>
    %497 = arith.mulf %496, %496 : vector<8x128xf32>
    %498 = arith.mulf %497, %496 : vector<8x128xf32>
    %499 = arith.mulf %498, %496 : vector<8x128xf32>
    %500 = arith.mulf %499, %496 : vector<8x128xf32>
    %501 = arith.mulf %468, %500 : vector<8x128xf32>
    %cst_146 = arith.constant 2.000000e-01 : f32
    %502 = vector.broadcast %cst_146 : f32 to vector<8x128xf32>
    %503 = arith.mulf %502, %501 : vector<8x128xf32>
    %cst_147 = arith.constant 1.200000e+00 : f32
    %504 = vector.broadcast %cst_147 : f32 to vector<8x128xf32>
    %505 = arith.subf %504, %503 : vector<8x128xf32>
    %506 = arith.mulf %496, %505 : vector<8x128xf32>
    %507 = arith.mulf %506, %506 : vector<8x128xf32>
    %508 = arith.mulf %507, %506 : vector<8x128xf32>
    %509 = arith.mulf %508, %506 : vector<8x128xf32>
    %510 = arith.mulf %509, %506 : vector<8x128xf32>
    %511 = arith.mulf %468, %510 : vector<8x128xf32>
    %cst_148 = arith.constant 2.000000e-01 : f32
    %512 = vector.broadcast %cst_148 : f32 to vector<8x128xf32>
    %513 = arith.mulf %512, %511 : vector<8x128xf32>
    %cst_149 = arith.constant 1.200000e+00 : f32
    %514 = vector.broadcast %cst_149 : f32 to vector<8x128xf32>
    %515 = arith.subf %514, %513 : vector<8x128xf32>
    %516 = arith.mulf %506, %515 : vector<8x128xf32>
    %517 = arith.mulf %516, %516 : vector<8x128xf32>
    %518 = arith.mulf %468, %468 : vector<8x128xf32>
    %519 = arith.mulf %517, %517 : vector<8x128xf32>
    %520 = arith.mulf %518, %519 : vector<8x128xf32>
    %cst_150 = arith.constant 4.045000e-02 : f32
    %521 = vector.broadcast %cst_150 : f32 to vector<8x128xf32>
    %522 = arith.cmpf ogt, %461, %521 : vector<8x128xf32>
    %cst_151 = arith.constant 0.0773993805 : f32
    %523 = vector.broadcast %cst_151 : f32 to vector<8x128xf32>
    %524 = arith.mulf %461, %523 : vector<8x128xf32>
    %525 = arith.select %522, %520, %524 : vector<8x128xi1>, vector<8x128xf32>
    %cst_152 = arith.constant 1.000000e+00 : f32
    %526 = vector.broadcast %cst_152 : f32 to vector<8x128xf32>
    %527 = arith.addf %14, %526 : vector<8x128xf32>
    %cst_153 = arith.constant 5.000000e-01 : f32
    %528 = vector.broadcast %cst_153 : f32 to vector<8x128xf32>
    %529 = arith.mulf %527, %528 : vector<8x128xf32>
    %cst_154 = arith.constant 5.500000e-02 : f32
    %530 = vector.broadcast %cst_154 : f32 to vector<8x128xf32>
    %531 = arith.addf %529, %530 : vector<8x128xf32>
    %cst_155 = arith.constant 0.947867274 : f32
    %532 = vector.broadcast %cst_155 : f32 to vector<8x128xf32>
    %533 = arith.mulf %531, %532 : vector<8x128xf32>
    %534 = arith.mulf %533, %533 : vector<8x128xf32>
    %cst_156 = arith.constant 8.000000e-03 : f32
    %535 = vector.broadcast %cst_156 : f32 to vector<8x128xf32>
    %536 = arith.maximumf %534, %535 : vector<8x128xf32>
    %537 = tpu.bitcast %536 : vector<8x128xf32> -> vector<8x128xi32>
    %538 = arith.sitofp %537 : vector<8x128xi32> to vector<8x128xf32>
    %cst_157 = arith.constant 2.000000e-01 : f32
    %539 = vector.broadcast %cst_157 : f32 to vector<8x128xf32>
    %540 = arith.mulf %539, %538 : vector<8x128xf32>
    %cst_158 = arith.constant 1.27797043E+9 : f32
    %541 = vector.broadcast %cst_158 : f32 to vector<8x128xf32>
    %542 = arith.subf %541, %540 : vector<8x128xf32>
    %543 = arith.fptosi %542 : vector<8x128xf32> to vector<8x128xi32>
    %544 = tpu.bitcast %543 : vector<8x128xi32> -> vector<8x128xf32>
    %545 = arith.mulf %544, %544 : vector<8x128xf32>
    %546 = arith.mulf %545, %544 : vector<8x128xf32>
    %547 = arith.mulf %546, %544 : vector<8x128xf32>
    %548 = arith.mulf %547, %544 : vector<8x128xf32>
    %549 = arith.mulf %536, %548 : vector<8x128xf32>
    %cst_159 = arith.constant 2.000000e-01 : f32
    %550 = vector.broadcast %cst_159 : f32 to vector<8x128xf32>
    %551 = arith.mulf %550, %549 : vector<8x128xf32>
    %cst_160 = arith.constant 1.200000e+00 : f32
    %552 = vector.broadcast %cst_160 : f32 to vector<8x128xf32>
    %553 = arith.subf %552, %551 : vector<8x128xf32>
    %554 = arith.mulf %544, %553 : vector<8x128xf32>
    %555 = arith.mulf %554, %554 : vector<8x128xf32>
    %556 = arith.mulf %555, %554 : vector<8x128xf32>
    %557 = arith.mulf %556, %554 : vector<8x128xf32>
    %558 = arith.mulf %557, %554 : vector<8x128xf32>
    %559 = arith.mulf %536, %558 : vector<8x128xf32>
    %cst_161 = arith.constant 2.000000e-01 : f32
    %560 = vector.broadcast %cst_161 : f32 to vector<8x128xf32>
    %561 = arith.mulf %560, %559 : vector<8x128xf32>
    %cst_162 = arith.constant 1.200000e+00 : f32
    %562 = vector.broadcast %cst_162 : f32 to vector<8x128xf32>
    %563 = arith.subf %562, %561 : vector<8x128xf32>
    %564 = arith.mulf %554, %563 : vector<8x128xf32>
    %565 = arith.mulf %564, %564 : vector<8x128xf32>
    %566 = arith.mulf %565, %564 : vector<8x128xf32>
    %567 = arith.mulf %566, %564 : vector<8x128xf32>
    %568 = arith.mulf %567, %564 : vector<8x128xf32>
    %569 = arith.mulf %536, %568 : vector<8x128xf32>
    %cst_163 = arith.constant 2.000000e-01 : f32
    %570 = vector.broadcast %cst_163 : f32 to vector<8x128xf32>
    %571 = arith.mulf %570, %569 : vector<8x128xf32>
    %cst_164 = arith.constant 1.200000e+00 : f32
    %572 = vector.broadcast %cst_164 : f32 to vector<8x128xf32>
    %573 = arith.subf %572, %571 : vector<8x128xf32>
    %574 = arith.mulf %564, %573 : vector<8x128xf32>
    %575 = arith.mulf %574, %574 : vector<8x128xf32>
    %576 = arith.mulf %575, %574 : vector<8x128xf32>
    %577 = arith.mulf %576, %574 : vector<8x128xf32>
    %578 = arith.mulf %577, %574 : vector<8x128xf32>
    %579 = arith.mulf %536, %578 : vector<8x128xf32>
    %cst_165 = arith.constant 2.000000e-01 : f32
    %580 = vector.broadcast %cst_165 : f32 to vector<8x128xf32>
    %581 = arith.mulf %580, %579 : vector<8x128xf32>
    %cst_166 = arith.constant 1.200000e+00 : f32
    %582 = vector.broadcast %cst_166 : f32 to vector<8x128xf32>
    %583 = arith.subf %582, %581 : vector<8x128xf32>
    %584 = arith.mulf %574, %583 : vector<8x128xf32>
    %585 = arith.mulf %584, %584 : vector<8x128xf32>
    %586 = arith.mulf %536, %536 : vector<8x128xf32>
    %587 = arith.mulf %585, %585 : vector<8x128xf32>
    %588 = arith.mulf %586, %587 : vector<8x128xf32>
    %cst_167 = arith.constant 4.045000e-02 : f32
    %589 = vector.broadcast %cst_167 : f32 to vector<8x128xf32>
    %590 = arith.cmpf ogt, %529, %589 : vector<8x128xf32>
    %cst_168 = arith.constant 0.0773993805 : f32
    %591 = vector.broadcast %cst_168 : f32 to vector<8x128xf32>
    %592 = arith.mulf %529, %591 : vector<8x128xf32>
    %593 = arith.select %590, %588, %592 : vector<8x128xi1>, vector<8x128xf32>
    %cst_169 = arith.constant 4.124530e-01 : f32
    %594 = vector.broadcast %cst_169 : f32 to vector<8x128xf32>
    %595 = arith.mulf %594, %457 : vector<8x128xf32>
    %cst_170 = arith.constant 3.575800e-01 : f32
    %596 = vector.broadcast %cst_170 : f32 to vector<8x128xf32>
    %597 = arith.mulf %596, %525 : vector<8x128xf32>
    %598 = arith.addf %595, %597 : vector<8x128xf32>
    %cst_171 = arith.constant 1.804230e-01 : f32
    %599 = vector.broadcast %cst_171 : f32 to vector<8x128xf32>
    %600 = arith.mulf %599, %593 : vector<8x128xf32>
    %601 = arith.addf %598, %600 : vector<8x128xf32>
    %cst_172 = arith.constant 2.126710e-01 : f32
    %602 = vector.broadcast %cst_172 : f32 to vector<8x128xf32>
    %603 = arith.mulf %602, %457 : vector<8x128xf32>
    %cst_173 = arith.constant 7.151600e-01 : f32
    %604 = vector.broadcast %cst_173 : f32 to vector<8x128xf32>
    %605 = arith.mulf %604, %525 : vector<8x128xf32>
    %606 = arith.addf %603, %605 : vector<8x128xf32>
    %cst_174 = arith.constant 7.216900e-02 : f32
    %607 = vector.broadcast %cst_174 : f32 to vector<8x128xf32>
    %608 = arith.mulf %607, %593 : vector<8x128xf32>
    %609 = arith.addf %606, %608 : vector<8x128xf32>
    %cst_175 = arith.constant 1.933400e-02 : f32
    %610 = vector.broadcast %cst_175 : f32 to vector<8x128xf32>
    %611 = arith.mulf %610, %457 : vector<8x128xf32>
    %cst_176 = arith.constant 1.191930e-01 : f32
    %612 = vector.broadcast %cst_176 : f32 to vector<8x128xf32>
    %613 = arith.mulf %612, %525 : vector<8x128xf32>
    %614 = arith.addf %611, %613 : vector<8x128xf32>
    %cst_177 = arith.constant 9.502270e-01 : f32
    %615 = vector.broadcast %cst_177 : f32 to vector<8x128xf32>
    %616 = arith.mulf %615, %593 : vector<8x128xf32>
    %617 = arith.addf %614, %616 : vector<8x128xf32>
    %cst_178 = arith.constant 1.05211103 : f32
    %618 = vector.broadcast %cst_178 : f32 to vector<8x128xf32>
    %619 = arith.mulf %601, %618 : vector<8x128xf32>
    %cst_179 = arith.constant 8.856000e-03 : f32
    %620 = vector.broadcast %cst_179 : f32 to vector<8x128xf32>
    %621 = arith.maximumf %619, %620 : vector<8x128xf32>
    %622 = tpu.bitcast %621 : vector<8x128xf32> -> vector<8x128xi32>
    %623 = arith.sitofp %622 : vector<8x128xi32> to vector<8x128xf32>
    %cst_180 = arith.constant 0.333333343 : f32
    %624 = vector.broadcast %cst_180 : f32 to vector<8x128xf32>
    %625 = arith.mulf %624, %623 : vector<8x128xf32>
    %cst_181 = arith.constant 1.4199671E+9 : f32
    %626 = vector.broadcast %cst_181 : f32 to vector<8x128xf32>
    %627 = arith.subf %626, %625 : vector<8x128xf32>
    %628 = arith.fptosi %627 : vector<8x128xf32> to vector<8x128xi32>
    %629 = tpu.bitcast %628 : vector<8x128xi32> -> vector<8x128xf32>
    %630 = arith.mulf %629, %629 : vector<8x128xf32>
    %631 = arith.mulf %630, %629 : vector<8x128xf32>
    %632 = arith.mulf %621, %631 : vector<8x128xf32>
    %cst_182 = arith.constant 0.333333343 : f32
    %633 = vector.broadcast %cst_182 : f32 to vector<8x128xf32>
    %634 = arith.mulf %633, %632 : vector<8x128xf32>
    %cst_183 = arith.constant 1.33333337 : f32
    %635 = vector.broadcast %cst_183 : f32 to vector<8x128xf32>
    %636 = arith.subf %635, %634 : vector<8x128xf32>
    %637 = arith.mulf %629, %636 : vector<8x128xf32>
    %638 = arith.mulf %637, %637 : vector<8x128xf32>
    %639 = arith.mulf %638, %637 : vector<8x128xf32>
    %640 = arith.mulf %621, %639 : vector<8x128xf32>
    %cst_184 = arith.constant 0.333333343 : f32
    %641 = vector.broadcast %cst_184 : f32 to vector<8x128xf32>
    %642 = arith.mulf %641, %640 : vector<8x128xf32>
    %cst_185 = arith.constant 1.33333337 : f32
    %643 = vector.broadcast %cst_185 : f32 to vector<8x128xf32>
    %644 = arith.subf %643, %642 : vector<8x128xf32>
    %645 = arith.mulf %637, %644 : vector<8x128xf32>
    %646 = arith.mulf %645, %645 : vector<8x128xf32>
    %647 = arith.mulf %646, %645 : vector<8x128xf32>
    %648 = arith.mulf %621, %647 : vector<8x128xf32>
    %cst_186 = arith.constant 0.333333343 : f32
    %649 = vector.broadcast %cst_186 : f32 to vector<8x128xf32>
    %650 = arith.mulf %649, %648 : vector<8x128xf32>
    %cst_187 = arith.constant 1.33333337 : f32
    %651 = vector.broadcast %cst_187 : f32 to vector<8x128xf32>
    %652 = arith.subf %651, %650 : vector<8x128xf32>
    %653 = arith.mulf %645, %652 : vector<8x128xf32>
    %654 = arith.mulf %653, %653 : vector<8x128xf32>
    %655 = arith.mulf %621, %654 : vector<8x128xf32>
    %cst_188 = arith.constant 8.856000e-03 : f32
    %656 = vector.broadcast %cst_188 : f32 to vector<8x128xf32>
    %657 = arith.cmpf ogt, %619, %656 : vector<8x128xf32>
    %cst_189 = arith.constant 7.787000e+00 : f32
    %658 = vector.broadcast %cst_189 : f32 to vector<8x128xf32>
    %659 = arith.mulf %658, %619 : vector<8x128xf32>
    %cst_190 = arith.constant 0.137931034 : f32
    %660 = vector.broadcast %cst_190 : f32 to vector<8x128xf32>
    %661 = arith.addf %659, %660 : vector<8x128xf32>
    %662 = arith.select %657, %655, %661 : vector<8x128xi1>, vector<8x128xf32>
    %cst_191 = arith.constant 1.000000e+00 : f32
    %663 = vector.broadcast %cst_191 : f32 to vector<8x128xf32>
    %664 = arith.mulf %609, %663 : vector<8x128xf32>
    %cst_192 = arith.constant 8.856000e-03 : f32
    %665 = vector.broadcast %cst_192 : f32 to vector<8x128xf32>
    %666 = arith.maximumf %664, %665 : vector<8x128xf32>
    %667 = tpu.bitcast %666 : vector<8x128xf32> -> vector<8x128xi32>
    %668 = arith.sitofp %667 : vector<8x128xi32> to vector<8x128xf32>
    %cst_193 = arith.constant 0.333333343 : f32
    %669 = vector.broadcast %cst_193 : f32 to vector<8x128xf32>
    %670 = arith.mulf %669, %668 : vector<8x128xf32>
    %cst_194 = arith.constant 1.4199671E+9 : f32
    %671 = vector.broadcast %cst_194 : f32 to vector<8x128xf32>
    %672 = arith.subf %671, %670 : vector<8x128xf32>
    %673 = arith.fptosi %672 : vector<8x128xf32> to vector<8x128xi32>
    %674 = tpu.bitcast %673 : vector<8x128xi32> -> vector<8x128xf32>
    %675 = arith.mulf %674, %674 : vector<8x128xf32>
    %676 = arith.mulf %675, %674 : vector<8x128xf32>
    %677 = arith.mulf %666, %676 : vector<8x128xf32>
    %cst_195 = arith.constant 0.333333343 : f32
    %678 = vector.broadcast %cst_195 : f32 to vector<8x128xf32>
    %679 = arith.mulf %678, %677 : vector<8x128xf32>
    %cst_196 = arith.constant 1.33333337 : f32
    %680 = vector.broadcast %cst_196 : f32 to vector<8x128xf32>
    %681 = arith.subf %680, %679 : vector<8x128xf32>
    %682 = arith.mulf %674, %681 : vector<8x128xf32>
    %683 = arith.mulf %682, %682 : vector<8x128xf32>
    %684 = arith.mulf %683, %682 : vector<8x128xf32>
    %685 = arith.mulf %666, %684 : vector<8x128xf32>
    %cst_197 = arith.constant 0.333333343 : f32
    %686 = vector.broadcast %cst_197 : f32 to vector<8x128xf32>
    %687 = arith.mulf %686, %685 : vector<8x128xf32>
    %cst_198 = arith.constant 1.33333337 : f32
    %688 = vector.broadcast %cst_198 : f32 to vector<8x128xf32>
    %689 = arith.subf %688, %687 : vector<8x128xf32>
    %690 = arith.mulf %682, %689 : vector<8x128xf32>
    %691 = arith.mulf %690, %690 : vector<8x128xf32>
    %692 = arith.mulf %691, %690 : vector<8x128xf32>
    %693 = arith.mulf %666, %692 : vector<8x128xf32>
    %cst_199 = arith.constant 0.333333343 : f32
    %694 = vector.broadcast %cst_199 : f32 to vector<8x128xf32>
    %695 = arith.mulf %694, %693 : vector<8x128xf32>
    %cst_200 = arith.constant 1.33333337 : f32
    %696 = vector.broadcast %cst_200 : f32 to vector<8x128xf32>
    %697 = arith.subf %696, %695 : vector<8x128xf32>
    %698 = arith.mulf %690, %697 : vector<8x128xf32>
    %699 = arith.mulf %698, %698 : vector<8x128xf32>
    %700 = arith.mulf %666, %699 : vector<8x128xf32>
    %cst_201 = arith.constant 8.856000e-03 : f32
    %701 = vector.broadcast %cst_201 : f32 to vector<8x128xf32>
    %702 = arith.cmpf ogt, %664, %701 : vector<8x128xf32>
    %cst_202 = arith.constant 7.787000e+00 : f32
    %703 = vector.broadcast %cst_202 : f32 to vector<8x128xf32>
    %704 = arith.mulf %703, %664 : vector<8x128xf32>
    %cst_203 = arith.constant 0.137931034 : f32
    %705 = vector.broadcast %cst_203 : f32 to vector<8x128xf32>
    %706 = arith.addf %704, %705 : vector<8x128xf32>
    %707 = arith.select %702, %700, %706 : vector<8x128xi1>, vector<8x128xf32>
    %cst_204 = arith.constant 0.918417036 : f32
    %708 = vector.broadcast %cst_204 : f32 to vector<8x128xf32>
    %709 = arith.mulf %617, %708 : vector<8x128xf32>
    %cst_205 = arith.constant 8.856000e-03 : f32
    %710 = vector.broadcast %cst_205 : f32 to vector<8x128xf32>
    %711 = arith.maximumf %709, %710 : vector<8x128xf32>
    %712 = tpu.bitcast %711 : vector<8x128xf32> -> vector<8x128xi32>
    %713 = arith.sitofp %712 : vector<8x128xi32> to vector<8x128xf32>
    %cst_206 = arith.constant 0.333333343 : f32
    %714 = vector.broadcast %cst_206 : f32 to vector<8x128xf32>
    %715 = arith.mulf %714, %713 : vector<8x128xf32>
    %cst_207 = arith.constant 1.4199671E+9 : f32
    %716 = vector.broadcast %cst_207 : f32 to vector<8x128xf32>
    %717 = arith.subf %716, %715 : vector<8x128xf32>
    %718 = arith.fptosi %717 : vector<8x128xf32> to vector<8x128xi32>
    %719 = tpu.bitcast %718 : vector<8x128xi32> -> vector<8x128xf32>
    %720 = arith.mulf %719, %719 : vector<8x128xf32>
    %721 = arith.mulf %720, %719 : vector<8x128xf32>
    %722 = arith.mulf %711, %721 : vector<8x128xf32>
    %cst_208 = arith.constant 0.333333343 : f32
    %723 = vector.broadcast %cst_208 : f32 to vector<8x128xf32>
    %724 = arith.mulf %723, %722 : vector<8x128xf32>
    %cst_209 = arith.constant 1.33333337 : f32
    %725 = vector.broadcast %cst_209 : f32 to vector<8x128xf32>
    %726 = arith.subf %725, %724 : vector<8x128xf32>
    %727 = arith.mulf %719, %726 : vector<8x128xf32>
    %728 = arith.mulf %727, %727 : vector<8x128xf32>
    %729 = arith.mulf %728, %727 : vector<8x128xf32>
    %730 = arith.mulf %711, %729 : vector<8x128xf32>
    %cst_210 = arith.constant 0.333333343 : f32
    %731 = vector.broadcast %cst_210 : f32 to vector<8x128xf32>
    %732 = arith.mulf %731, %730 : vector<8x128xf32>
    %cst_211 = arith.constant 1.33333337 : f32
    %733 = vector.broadcast %cst_211 : f32 to vector<8x128xf32>
    %734 = arith.subf %733, %732 : vector<8x128xf32>
    %735 = arith.mulf %727, %734 : vector<8x128xf32>
    %736 = arith.mulf %735, %735 : vector<8x128xf32>
    %737 = arith.mulf %736, %735 : vector<8x128xf32>
    %738 = arith.mulf %711, %737 : vector<8x128xf32>
    %cst_212 = arith.constant 0.333333343 : f32
    %739 = vector.broadcast %cst_212 : f32 to vector<8x128xf32>
    %740 = arith.mulf %739, %738 : vector<8x128xf32>
    %cst_213 = arith.constant 1.33333337 : f32
    %741 = vector.broadcast %cst_213 : f32 to vector<8x128xf32>
    %742 = arith.subf %741, %740 : vector<8x128xf32>
    %743 = arith.mulf %735, %742 : vector<8x128xf32>
    %744 = arith.mulf %743, %743 : vector<8x128xf32>
    %745 = arith.mulf %711, %744 : vector<8x128xf32>
    %cst_214 = arith.constant 8.856000e-03 : f32
    %746 = vector.broadcast %cst_214 : f32 to vector<8x128xf32>
    %747 = arith.cmpf ogt, %709, %746 : vector<8x128xf32>
    %cst_215 = arith.constant 7.787000e+00 : f32
    %748 = vector.broadcast %cst_215 : f32 to vector<8x128xf32>
    %749 = arith.mulf %748, %709 : vector<8x128xf32>
    %cst_216 = arith.constant 0.137931034 : f32
    %750 = vector.broadcast %cst_216 : f32 to vector<8x128xf32>
    %751 = arith.addf %749, %750 : vector<8x128xf32>
    %752 = arith.select %747, %745, %751 : vector<8x128xi1>, vector<8x128xf32>
    %753 = arith.subf %662, %707 : vector<8x128xf32>
    %cst_217 = arith.constant 5.000000e+02 : f32
    %754 = vector.broadcast %cst_217 : f32 to vector<8x128xf32>
    %755 = arith.mulf %754, %753 : vector<8x128xf32>
    %756 = arith.subf %707, %752 : vector<8x128xf32>
    %cst_218 = arith.constant 2.000000e+02 : f32
    %757 = vector.broadcast %cst_218 : f32 to vector<8x128xf32>
    %758 = arith.mulf %757, %756 : vector<8x128xf32>
    %759 = math.atan2 %758, %755 : vector<8x128xf32>
    %cst_219 = arith.constant 0.000000e+00 : f32
    %760 = vector.broadcast %cst_219 : f32 to vector<8x128xf32>
    %761 = arith.cmpf olt, %759, %760 : vector<8x128xf32>
    %cst_220 = arith.constant 6.28318548 : f32
    %762 = vector.broadcast %cst_220 : f32 to vector<8x128xf32>
    %763 = arith.addf %759, %762 : vector<8x128xf32>
    %764 = arith.select %761, %763, %759 : vector<8x128xi1>, vector<8x128xf32>
    %765 = arith.subf %389, %764 : vector<8x128xf32>
    %c0_221 = arith.constant 0 : index
    %c0_222 = arith.constant 0 : index
    %766 = memref.load %arg4[%c0_221, %c0_222] : memref<1x1xf32, #tpu.memory_space<smem>>
    %767 = arith.mulf %765, %765 : vector<8x128xf32>
    %768 = vector.shape_cast %767 : vector<8x128xf32> to vector<1x8x128xf32>
    %cst_223 = arith.constant dense<0.000000e+00> : vector<1xf32>
    %769 = vector.multi_reduction <add>, %768, %cst_223 [1, 2] : vector<1x8x128xf32> to vector<1xf32>
    %770 = vector.shape_cast %769 : vector<1xf32> to vector<1x1x1xf32>
    %771 = vector.extract %770[0, 0, 0] : f32 from vector<1x1x1xf32>
    %772 = arith.addf %766, %771 : f32
    %c0_224 = arith.constant 0 : index
    %c0_225 = arith.constant 0 : index
    %773 = memref.load %arg4[%c0_224, %c0_225] : memref<1x1xf32, #tpu.memory_space<smem>>
    memref.store %772, %arg4[%c0_224, %c0_225] : memref<1x1xf32, #tpu.memory_space<smem>>
    return
  }
  func.func @transform_0(%arg0: i32, %arg1: i32) -> (i32, i32, i32) {
    %c1_i32 = arith.constant 1 : i32
    %0 = arith.muli %arg0, %c1_i32 : i32
    %1 = arith.addi %0, %arg1 : i32
    %c0_i32 = arith.constant 0 : i32
    %c0_i32_0 = arith.constant 0 : i32
    %c0_i32_1 = arith.constant 0 : i32
    return %c0_i32, %1, %c0_i32_0 : i32, i32, i32
  }
  func.func @transform_1(%arg0: i32, %arg1: i32) -> (i32, i32, i32) {
    %c1_i32 = arith.constant 1 : i32
    %0 = arith.muli %arg0, %c1_i32 : i32
    %1 = arith.addi %0, %arg1 : i32
    %c0_i32 = arith.constant 0 : i32
    %c0_i32_0 = arith.constant 0 : i32
    %c0_i32_1 = arith.constant 0 : i32
    return %c0_i32, %1, %c0_i32_0 : i32, i32, i32
  }
  func.func @transform_2(%arg0: i32, %arg1: i32) -> (i32, i32) {
    %c0_i32 = arith.constant 0 : i32
    %c0_i32_0 = arith.constant 0 : i32
    return %arg0, %c0_i32 : i32, i32
  }
}

</mosaic_0001>

<bundles_post_ra>
// kernel: squeeze.2
= control target key start
LH: loop header
LB: loop body
LE: loop exit
PB: predicated region body
PF: predicated region fallthrough
CT: control target
= control target key end

     0   :  { %vm5_vm0 = vcmask 1045508   ;;  %s14_s6 = smov 3  ;;  %s17_s7 = smov 12  ;;  %vm19_vm1 = vcmask 1043458   ;;  %vm7_vm2 = vcmask 130048   ;;  %vm28_vm3 = vcmask 1048448   ;;  %s299_s0 = inlined_call_operand.vmem [shape: f32[1,3,16,16], index: 0, kind: input, shape index: {}]   ;;  %s300_s1 = inlined_call_operand.vmem [shape: f32[3,256], index: 1, kind: output, shape index: {}]  }
   0x1   :  { %v160_v0 = vld [vmem:[%s299_s0 + $0x7] ss:$16 sm:%s14_s6]   ;;  %s22_s12 = smov 48  ;;  %s52_s15 = smov 3  ;;  %vm47_vm4 = vcmask 917248   ;;  %vm66_vm5 = vcmask 786048  }
   0x2   :  { %v161_v1 = vld [vmem:[%s299_s0 + $0x57] ss:$-24 sm:%s17_s7]   ;;  %s55_s16 = smov 12  ;;  %v166_v5 = vld [vmem:[%s299_s0 + $0x5] ss:$16 sm:%s52_s15]   ;;  %s60_s21 = smov 48 }
   0x3   :  { %v20_v2 = vsel %vm19_vm1, %v161_v1, %v160_v0  ;;  %v162_v3 = vld [vmem:[%s299_s0 - $0x21] ss:$16 sm:%s22_s12]   ;;  %v167_v6 = vld [vmem:[%s299_s0 + $0x55] ss:$-24 sm:%s55_s16]   ;;  %s189_s22 = smov 112   ;;  %s33_s25 = smov 3 }
   0x4   :  { %v25_v4 = vsel %vm5_vm0, %v162_v3, %v20_v2  ;;  %v58_v7 = vsel %vm19_vm1, %v167_v6, %v166_v5  ;;  %v168_v8 = vld [vmem:[%s299_s0 - $0x23] ss:$16 sm:%s60_s21]   ;;  %s36_s26 = smov 12  ;;  %v163_v10 = vld [vmem:[%s299_s0 + $0x6] ss:$16 sm:%s33_s25]   ;;  %s41_s2 = smov 48 }
   0x5   :  { %26 = vrot.lane.b32.xlu0 %v25_v4, %s189_s22  ;;  %v63_v9 = vsel %vm5_vm0, %v168_v8, %v58_v7  ;;  %v164_v11 = vld [vmem:[%s299_s0 + $0x56] ss:$-24 sm:%s36_s26]   ;;  %s190_s3 = smov 80   ;;  %s71_s6 = smov 3  ;;  %vm85_vm6 = vcmask 654848   ;;  %vm104_vm7 = vcmask 523648  }
   0x6   :  { %64 = vrot.lane.b32.xlu1 %v63_v9, %s190_s3  ;;  %v39_v12 = vsel %vm19_vm1, %v164_v11, %v163_v10  ;;  %v165_v13 = vld [vmem:[%s299_s0 - $0x22] ss:$16 sm:%s41_s2]   ;;  %s74_s7 = smov 12  ;;  %s79_s12 = smov 48  ;;  %vm123_vm8 = vcmask 392448   ;;  %vm142_vm9 = vcmask 261248  }
   0x7   :  { %v44_v14 = vsel %vm5_vm0, %v165_v13, %v39_v12  ;;  %v169_v15 = vld [vmem:[%s299_s0 + $0x4] ss:$16 sm:%s71_s6]   ;;  %s191_s13 = smov 96   ;;  %v171_v18 = vld [vmem:[%s299_s0 - $0x24] ss:$16 sm:%s79_s12]   ;;  %s90_s16 = smov 3 }
   0x8   :  { %v170_v16 = vld [vmem:[%s299_s0 + $0x54] ss:$-24 sm:%s74_s7]   ;;  %s93_s17 = smov 12  ;;  %v172_v20 = vld [vmem:[%s299_s0 + $0x3] ss:$16 sm:%s90_s16]   ;;  %s98_s22 = smov 48 }
   0x9   :  { %45 = vrot.lane.b32.xlu0 %v44_v14, %s191_s13  ;;  %v77_v17 = vsel %vm19_vm1, %v170_v16, %v169_v15  ;;  %v173_v21 = vld [vmem:[%s299_s0 + $0x53] ss:$-24 sm:%s93_s17]   ;;  %s192_s23 = smov 64   ;;  %s109_s26 = smov 3 }
   0xa   :  { %v82_v19 = vsel %vm5_vm0, %v171_v18, %v77_v17  ;;  %v96_v22 = vsel %vm19_vm1, %v173_v21, %v172_v20  ;;  %v174_v23 = vld [vmem:[%s299_s0 - $0x25] ss:$16 sm:%s98_s22]   ;;  %s112_s27 = smov 12  ;;  %v175_v25 = vld [vmem:[%s299_s0 + $0x2] ss:$16 sm:%s109_s26]   ;;  %s117_s3 = smov 48 }
   0xb   :  { %83 = vrot.lane.b32.xlu1 %v82_v19, %s192_s23  ;;  %v101_v24 = vsel %vm5_vm0, %v174_v23, %v96_v22  ;;  %v176_v26 = vld [vmem:[%s299_s0 + $0x52] ss:$-24 sm:%s112_s27]   ;;  %s193_s4 = smov 48   ;;  %s128_s7 = smov 3 }
   0xc   :  { %v115_v27 = vsel %vm19_vm1, %v176_v26, %v175_v25  ;;  %v177_v28 = vld [vmem:[%s299_s0 - $0x26] ss:$16 sm:%s117_s3]   ;;  %s131_s8 = smov 12  ;;  %v178_v30 = vld [vmem:[%s299_s0 + $0x1] ss:$16 sm:%s128_s7]   ;;  %s136_s13 = smov 48 }
   0xd   :  { %102 = vrot.lane.b32.xlu0 %v101_v24, %s193_s4  ;;  %v120_v29 = vsel %vm5_vm0, %v177_v28, %v115_v27  ;;  %v179_v31 = vld [vmem:[%s299_s0 + $0x51] ss:$-24 sm:%s131_s8]   ;;  %s194_s14 = smov 32   ;;  %v2_v34 = vld [vmem:[%s299_s0] ss:$8 sm:$0xf]  }
   0xe   :  { %v134_v32 = vsel %vm19_vm1, %v179_v31, %v178_v30  ;;  %v180_v33 = vld [vmem:[%s299_s0 - $0x27] ss:$16 sm:%s136_s13]   ;;  %s3_s19 = smov 48 }
   0xf   :  { %121 = vrot.lane.b32.xlu1 %v120_v29, %s194_s14  ;;  %v139_v35 = vsel %vm5_vm0, %v180_v33, %v134_v32  ;;  %v4_v36 = vld [vmem:[%s299_s0] ss:$8 sm:%s3_s19]   ;;  %s195_s0 = smov 16  }
  0x10   :  { %v6_v37 = vsel %vm5_vm0, %v4_v36, %v2_v34 }
  0x11   :  { %140 = vrot.lane.b32.xlu0 %v139_v35, %s195_s0  ;;  %8 = vst.msk [vmem:[#allocation0] ss:$8 sm:$0x3] %vm7_vm2, %v6_v37   ;;  %10 = vst.msk [vmem:[#allocation0 - $0xf] ss:$8 sm:$0xc] %vm7_vm2, %v6_v37  }
  0x12   :  { %12 = vst.msk [vmem:[#allocation0 - $0x1e] ss:$8 sm:$0x30] %vm7_vm2, %v6_v37  }
  0x77   :  { %v27_v38 = vpop.permute.xlu0 %26  }
  0x78   :  { %29 = vst.msk [vmem:[#allocation0] sm:$0x7] %vm28_vm3, %v27_v38   ;;  %31 = vst.msk [vmem:[#allocation0 + $0x5] sm:$0x38] %vm28_vm3, %v27_v38   ;;  %v65_v39 = vpop.permute.xlu1 %64  }
  0x7b   :  { %v46_v40 = vpop.permute.xlu0 %45  }
  0x7c   :  { %48 = vst.msk [vmem:[#allocation0] sm:$0x7] %vm47_vm4, %v46_v40   ;;  %50 = vst.msk [vmem:[#allocation0 + $0x5] sm:$0x38] %vm47_vm4, %v46_v40  }
  0x7d   :  { %67 = vst.msk [vmem:[#allocation0] sm:$0x7] %vm66_vm5, %v65_v39   ;;  %69 = vst.msk [vmem:[#allocation0 + $0x5] sm:$0x38] %vm66_vm5, %v65_v39   ;;  %v84_v41 = vpop.permute.xlu1 %83  }
  0x7e   :  { %86 = vst.msk [vmem:[#allocation0] sm:$0x7] %vm85_vm6, %v84_v41   ;;  %88 = vst.msk [vmem:[#allocation0 + $0x5] sm:$0x38] %vm85_vm6, %v84_v41  }
  0x7f   :  { %v103_v42 = vpop.permute.xlu0 %102  }
  0x80   :  { %105 = vst.msk [vmem:[#allocation0] sm:$0x7] %vm104_vm7, %v103_v42   ;;  %107 = vst.msk [vmem:[#allocation0 + $0x5] sm:$0x38] %vm104_vm7, %v103_v42  }
  0x81   :  { %v122_v43 = vpop.permute.xlu1 %121  }
  0x82   :  { %124 = vst.msk [vmem:[#allocation0] sm:$0x7] %vm123_vm8, %v122_v43   ;;  %126 = vst.msk [vmem:[#allocation0 + $0x5] sm:$0x38] %vm123_vm8, %v122_v43  }
  0x83   :  { %v141_v44 = vpop.permute.xlu0 %140  }
  0x84   :  { %143 = vst.msk [vmem:[#allocation0] sm:$0x7] %vm142_vm9, %v141_v44   ;;  %145 = vst.msk [vmem:[#allocation0 + $0x5] sm:$0x38] %vm142_vm9, %v141_v44  }
  0x8b   :  { %v150_v45 = vld [vmem:[#allocation0] sm:$0xf]  ;;  %v155_v46 = vld [vmem:[#allocation0 + $0x8] sm:$0xf] }
  0x8c   :  { %153 = vst [vmem:[%s300_s1] sm:$0xf] %v150_v45  ;;  %181 = vst [vmem:[%s300_s1 + $0x4] sm:$0xf] %v155_v46 }

// kernel: hue_l2_loss2.1
= control target key start
LH: loop header
LB: loop body
LE: loop exit
PB: predicated region body
PF: predicated region fallthrough
CT: control target
= control target key end

     0   :  { %7 = vsyncpa [#allocation3], 0  ;;  %s784_s13 = smov 0.0   ;;  %s787_s23 = smov [#allocation2]   ;;  %s1072_s0 = inlined_call_operand.vmem [shape: f32[3,8,128], index: 0, kind: input, shape index: {}]   ;;  %s1073_s1 = inlined_call_operand.vmem [shape: f32[3,8,128], index: 1, kind: input, shape index: {}]   ;;  %s1074_s2 = inlined_call_operand.hbm [shape: f32[1,1], index: 2, kind: output, shape index: {}]  }
   0x1   :  { %v52_v0 = vld [vmem:[%s1072_s0] sm:$0xff]  ;;  %v736_v1 = vld [vmem:[%s1072_s0 + $0x8] sm:$0xff]  ;;  %51 = sst [smem:[#allocation2]] %s784_s13  ;;  %v737_v2 = vld [vmem:[%s1072_s0 + $0x10] sm:$0xff] }
   0x2   :  { %v57_v3 = vld [vmem:[%s1073_s1] sm:$0xff]  ;;  %v738_v4 = vld [vmem:[%s1073_s1 + $0x8] sm:$0xff]  ;;  %v62_v5 = vadd.f32 1.0, %v52_v0  ;;  %v113_v6 = vadd.f32 1.0, %v736_v1  ;;  %v164_v7 = vadd.f32 1.0, %v737_v2  ;;  %v739_v12 = vld [vmem:[%s1073_s1 + $0x10] sm:$0xff] }
   0x3   :  { %v379_v8 = vadd.f32 1.0, %v57_v3  ;;  %v430_v9 = vadd.f32 1.0, %v738_v4  ;;  %v481_v20 = vadd.f32 1.0, %v739_v12  ;;  %s697_s0 = sld [smem:[#allocation2]] }
   0x4   :  { %v818_v10 = vmul.f32 0.5, %v62_v5  ;;  %v820_v11 = vmul.f32 0.5, %v113_v6  ;;  %v825_v13 = vmul.f32 0.5, %v164_v7 }
   0x5   :  { %v827_v14 = vmul.f32 0.5, %v379_v8  ;;  %v831_v17 = vmul.f32 0.5, %v430_v9  ;;  %v838_v30 = vmul.f32 0.5, %v481_v20 }
   0x6   :  { %v64_v15 = vadd.f32 0.055, %v818_v10  ;;  %v115_v16 = vadd.f32 0.055, %v820_v11  ;;  %v166_v19 = vadd.f32 0.055, %v825_v13 }
   0x7   :  { %v381_v22 = vadd.f32 0.055, %v827_v14  ;;  %v432_v27 = vadd.f32 0.055, %v831_v17  ;;  %v483_v36 = vadd.f32 0.055, %v838_v30 }
   0x8   :  { %v65_v18 = vmul.f32 0.9478673, %v64_v15  ;;  %v116_v21 = vmul.f32 0.9478673, %v115_v16  ;;  %v167_v24 = vmul.f32 0.9478673, %v166_v19 }
   0x9   :  { %v382_v26 = vmul.f32 0.9478673, %v381_v22  ;;  %v433_v33 = vmul.f32 0.9478673, %v432_v27  ;;  %v484_v42 = vmul.f32 0.9478673, %v483_v36 }
   0xa   :  { %v66_v23 = vmul.f32 %v65_v18, %v65_v18  ;;  %v117_v25 = vmul.f32 %v116_v21, %v116_v21  ;;  %v168_v29 = vmul.f32 %v167_v24, %v167_v24  ;;  %vm110_vm0 = vcmp.gt.f32.partialorder %v818_v10, 0.04045 }
   0xb   :  { %v383_v32 = vmul.f32 %v382_v26, %v382_v26  ;;  %v434_v39 = vmul.f32 %v433_v33, %v433_v33  ;;  %v485_v48 = vmul.f32 %v484_v42, %v484_v42  ;;  %vm161_vm1 = vcmp.gt.f32.partialorder %v820_v11, 0.04045 }
   0xc   :  { %v836_v28 = vmax.f32 %v66_v23, 0.008  ;;  %v840_v31 = vmax.f32 %v117_v25, 0.008  ;;  %v843_v35 = vmax.f32 %v168_v29, 0.008 }
   0xd   :  { %v847_v38 = vmax.f32 %v383_v32, 0.008  ;;  %v851_v45 = vmax.f32 %v434_v39, 0.008  ;;  %v854_v54 = vmax.f32 %v485_v48, 0.008 }
   0xe   :  { %v69_v34 = vcvt.s32.f32 %v836_v28  ;;  %v120_v37 = vcvt.s32.f32 %v840_v31  ;;  %v171_v41 = vcvt.s32.f32 %v843_v35  ;;  %vm212_vm2 = vcmp.gt.f32.partialorder %v825_v13, 0.04045 }
   0xf   :  { %v386_v44 = vcvt.s32.f32 %v847_v38  ;;  %v437_v51 = vcvt.s32.f32 %v851_v45  ;;  %v488_v60 = vcvt.s32.f32 %v854_v54  ;;  %vm427_vm3 = vcmp.gt.f32.partialorder %v827_v14, 0.04045 }
  0x10   :  { %v70_v40 = vmul.f32 0.2, %v69_v34  ;;  %v121_v43 = vmul.f32 0.2, %v120_v37  ;;  %v172_v47 = vmul.f32 0.2, %v171_v41 }
  0x11   :  { %v387_v50 = vmul.f32 0.2, %v386_v44  ;;  %v438_v57 = vmul.f32 0.2, %v437_v51  ;;  %v489_v2 = vmul.f32 0.2, %v488_v60 }
  0x12   :  { %v71_v46 = vsub.f32 1.2779704e+09, %v70_v40  ;;  %v122_v49 = vsub.f32 1.2779704e+09, %v121_v43  ;;  %v173_v53 = vsub.f32 1.2779704e+09, %v172_v47 }
  0x13   :  { %v388_v56 = vsub.f32 1.2779704e+09, %v387_v50  ;;  %v439_v63 = vsub.f32 1.2779704e+09, %v438_v57  ;;  %v490_v8 = vsub.f32 1.2779704e+09, %v489_v2 }
  0x14   :  { %v740_v52 = vtrunc.f32 %v71_v46  ;;  %v742_v55 = vtrunc.f32 %v122_v49  ;;  %v744_v59 = vtrunc.f32 %v173_v53  ;;  %vm478_vm4 = vcmp.gt.f32.partialorder %v831_v17, 0.04045 }
  0x15   :  { %v752_v62 = vtrunc.f32 %v388_v56  ;;  %v754_v5 = vtrunc.f32 %v439_v63  ;;  %v756_v19 = vtrunc.f32 %v490_v8  ;;  %vm529_vm5 = vcmp.gt.f32.partialorder %v838_v30, 0.04045 }
  0x16   :  { %v741_v58 = vcvt.f32.s32 %v740_v52  ;;  %v743_v61 = vcvt.f32.s32 %v742_v55  ;;  %v745_v1 = vcvt.f32.s32 %v744_v59 }
  0x17   :  { %v753_v4 = vcvt.f32.s32 %v752_v62  ;;  %v755_v15 = vcvt.f32.s32 %v754_v5  ;;  %v757_v25 = vcvt.f32.s32 %v756_v19 }
  0x18   :  { %v74_v0 = vmul.f32 %v741_v58, %v741_v58  ;;  %v125_v3 = vmul.f32 %v743_v61, %v743_v61  ;;  %v176_v7 = vmul.f32 %v745_v1, %v745_v1 }
  0x19   :  { %v391_v12 = vmul.f32 %v753_v4, %v753_v4  ;;  %v442_v22 = vmul.f32 %v755_v15, %v755_v15  ;;  %v493_v34 = vmul.f32 %v757_v25, %v757_v25 }
  0x1a   :  { %v75_v6 = vmul.f32 %v741_v58, %v74_v0  ;;  %v126_v9 = vmul.f32 %v743_v61, %v125_v3  ;;  %v177_v18 = vmul.f32 %v745_v1, %v176_v7 }
  0x1b   :  { %v392_v21 = vmul.f32 %v753_v4, %v391_v12  ;;  %v443_v29 = vmul.f32 %v755_v15, %v442_v22  ;;  %v494_v42 = vmul.f32 %v757_v25, %v493_v34 }
  0x1c   :  { %v76_v16 = vmul.f32 %v741_v58, %v75_v6  ;;  %v127_v20 = vmul.f32 %v743_v61, %v126_v9  ;;  %v178_v24 = vmul.f32 %v745_v1, %v177_v18 }
  0x1d   :  { %v393_v27 = vmul.f32 %v753_v4, %v392_v21  ;;  %v444_v39 = vmul.f32 %v755_v15, %v443_v29  ;;  %v495_v49 = vmul.f32 %v757_v25, %v494_v42 }
  0x1e   :  { %v77_v23 = vmul.f32 %v741_v58, %v76_v16  ;;  %v128_v26 = vmul.f32 %v743_v61, %v127_v20  ;;  %v179_v33 = vmul.f32 %v745_v1, %v178_v24 }
  0x1f   :  { %v394_v37 = vmul.f32 %v753_v4, %v393_v27  ;;  %v445_v46 = vmul.f32 %v755_v15, %v444_v39  ;;  %v496_v56 = vmul.f32 %v757_v25, %v495_v49 }
  0x20   :  { %v78_v32 = vmul.f32 %v77_v23, %v836_v28  ;;  %v129_v36 = vmul.f32 %v128_v26, %v840_v31  ;;  %v180_v41 = vmul.f32 %v179_v33, %v843_v35 }
  0x21   :  { %v395_v44 = vmul.f32 %v394_v37, %v847_v38  ;;  %v446_v52 = vmul.f32 %v445_v46, %v851_v45  ;;  %v497_v0 = vmul.f32 %v496_v56, %v854_v54 }
  0x22   :  { %v79_v40 = vmul.f32 0.2, %v78_v32  ;;  %v130_v43 = vmul.f32 0.2, %v129_v36  ;;  %v181_v48 = vmul.f32 0.2, %v180_v41 }
  0x23   :  { %v396_v51 = vmul.f32 0.2, %v395_v44  ;;  %v447_v60 = vmul.f32 0.2, %v446_v52  ;;  %v498_v8 = vmul.f32 0.2, %v497_v0 }
  0x24   :  { %v80_v47 = vsub.f32 1.2, %v79_v40  ;;  %v131_v50 = vsub.f32 1.2, %v130_v43  ;;  %v182_v55 = vsub.f32 1.2, %v181_v48 }
  0x25   :  { %v397_v59 = vsub.f32 1.2, %v396_v51  ;;  %v448_v5 = vsub.f32 1.2, %v447_v60  ;;  %v499_v19 = vsub.f32 1.2, %v498_v8 }
  0x26   :  { %v81_v53 = vmul.f32 %v741_v58, %v80_v47  ;;  %v132_v57 = vmul.f32 %v743_v61, %v131_v50  ;;  %v183_v63 = vmul.f32 %v745_v1, %v182_v55 }
  0x27   :  { %v398_v3 = vmul.f32 %v753_v4, %v397_v59  ;;  %v449_v16 = vmul.f32 %v755_v15, %v448_v5  ;;  %v500_v1 = vmul.f32 %v757_v25, %v499_v19 }
  0x28   :  { %v82_v62 = vmul.f32 %v81_v53, %v81_v53  ;;  %v133_v2 = vmul.f32 %v132_v57, %v132_v57  ;;  %v184_v7 = vmul.f32 %v183_v63, %v183_v63 }
  0x29   :  { %v399_v12 = vmul.f32 %v398_v3, %v398_v3  ;;  %v450_v21 = vmul.f32 %v449_v16, %v449_v16  ;;  %v501_v32 = vmul.f32 %v500_v1, %v500_v1 }
  0x2a   :  { %v83_v6 = vmul.f32 %v82_v62, %v81_v53  ;;  %v134_v9 = vmul.f32 %v133_v2, %v132_v57  ;;  %v185_v58 = vmul.f32 %v184_v7, %v183_v63 }
  0x2b   :  { %v400_v61 = vmul.f32 %v399_v12, %v398_v3  ;;  %v451_v27 = vmul.f32 %v450_v21, %v449_v16  ;;  %v502_v39 = vmul.f32 %v501_v32, %v500_v1 }
  0x2c   :  { %v84_v18 = vmul.f32 %v83_v6, %v81_v53  ;;  %v135_v20 = vmul.f32 %v134_v9, %v132_v57  ;;  %v186_v23 = vmul.f32 %v185_v58, %v183_v63 }
  0x2d   :  { %v401_v26 = vmul.f32 %v400_v61, %v398_v3  ;;  %v452_v15 = vmul.f32 %v451_v27, %v449_v16  ;;  %v503_v44 = vmul.f32 %v502_v39, %v500_v1 }
  0x2e   :  { %v85_v22 = vmul.f32 %v84_v18, %v81_v53  ;;  %v136_v24 = vmul.f32 %v135_v20, %v132_v57  ;;  %v187_v29 = vmul.f32 %v186_v23, %v183_v63 }
  0x2f   :  { %v402_v34 = vmul.f32 %v401_v26, %v398_v3  ;;  %v453_v42 = vmul.f32 %v452_v15, %v449_v16  ;;  %v504_v51 = vmul.f32 %v503_v44, %v500_v1 }
  0x30   :  { %v86_v4 = vmul.f32 %v85_v22, %v836_v28  ;;  %v137_v33 = vmul.f32 %v136_v24, %v840_v31  ;;  %v188_v37 = vmul.f32 %v187_v29, %v843_v35 }
  0x31   :  { %v403_v41 = vmul.f32 %v402_v34, %v847_v38  ;;  %v454_v48 = vmul.f32 %v453_v42, %v851_v45  ;;  %v505_v62 = vmul.f32 %v504_v51, %v854_v54 }
  0x32   :  { %v87_v36 = vmul.f32 0.2, %v86_v4  ;;  %v138_v40 = vmul.f32 0.2, %v137_v33  ;;  %v189_v43 = vmul.f32 0.2, %v188_v37 }
  0x33   :  { %v404_v47 = vmul.f32 0.2, %v403_v41  ;;  %v455_v56 = vmul.f32 0.2, %v454_v48  ;;  %v506_v8 = vmul.f32 0.2, %v505_v62 }
  0x34   :  { %v88_v25 = vsub.f32 1.2, %v87_v36  ;;  %v139_v46 = vsub.f32 1.2, %v138_v40  ;;  %v190_v50 = vsub.f32 1.2, %v189_v43 }
  0x35   :  { %v405_v55 = vsub.f32 1.2, %v404_v47  ;;  %v456_v5 = vsub.f32 1.2, %v455_v56  ;;  %v507_v19 = vsub.f32 1.2, %v506_v8 }
  0x36   :  { %v89_v49 = vmul.f32 %v88_v25, %v81_v53  ;;  %v140_v52 = vmul.f32 %v139_v46, %v132_v57  ;;  %v191_v60 = vmul.f32 %v190_v50, %v183_v63 }
  0x37   :  { %v406_v2 = vmul.f32 %v405_v55, %v398_v3  ;;  %v457_v18 = vmul.f32 %v456_v5, %v449_v16  ;;  %v508_v63 = vmul.f32 %v507_v19, %v500_v1 }
  0x38   :  { %v90_v59 = vmul.f32 %v89_v49, %v89_v49  ;;  %v141_v0 = vmul.f32 %v140_v52, %v140_v52  ;;  %v192_v7 = vmul.f32 %v191_v60, %v191_v60 }
  0x39   :  { %v407_v12 = vmul.f32 %v406_v2, %v406_v2  ;;  %v458_v61 = vmul.f32 %v457_v18, %v457_v18  ;;  %v509_v4 = vmul.f32 %v508_v63, %v508_v63 }
  0x3a   :  { %v91_v6 = vmul.f32 %v90_v59, %v89_v49  ;;  %v142_v9 = vmul.f32 %v141_v0, %v140_v52  ;;  %v193_v53 = vmul.f32 %v192_v7, %v191_v60 }
  0x3b   :  { %v408_v57 = vmul.f32 %v407_v12, %v406_v2  ;;  %v459_v26 = vmul.f32 %v458_v61, %v457_v18  ;;  %v510_v15 = vmul.f32 %v509_v4, %v508_v63 }
  0x3c   :  { %v92_v58 = vmul.f32 %v91_v6, %v89_v49  ;;  %v143_v20 = vmul.f32 %v142_v9, %v140_v52  ;;  %v194_v22 = vmul.f32 %v193_v53, %v191_v60 }
  0x3d   :  { %v409_v24 = vmul.f32 %v408_v57, %v406_v2  ;;  %v460_v16 = vmul.f32 %v459_v26, %v457_v18  ;;  %v511_v41 = vmul.f32 %v510_v15, %v508_v63 }
  0x3e   :  { %v93_v21 = vmul.f32 %v92_v58, %v89_v49  ;;  %v144_v23 = vmul.f32 %v143_v20, %v140_v52  ;;  %v195_v27 = vmul.f32 %v194_v22, %v191_v60 }
  0x3f   :  { %v410_v32 = vmul.f32 %v409_v24, %v406_v2  ;;  %v461_v39 = vmul.f32 %v460_v16, %v457_v18  ;;  %v512_v47 = vmul.f32 %v511_v41, %v508_v63 }
  0x40   :  { %v94_v3 = vmul.f32 %v93_v21, %v836_v28  ;;  %v145_v29 = vmul.f32 %v144_v23, %v840_v31  ;;  %v196_v34 = vmul.f32 %v195_v27, %v843_v35 }
  0x41   :  { %v411_v37 = vmul.f32 %v410_v32, %v847_v38  ;;  %v462_v43 = vmul.f32 %v461_v39, %v851_v45  ;;  %v513_v59 = vmul.f32 %v512_v47, %v854_v54  ;;  %v111_v39 = vmul.f32 0.07739938, %v818_v10 }
  0x42   :  { %v95_v33 = vmul.f32 0.2, %v94_v3  ;;  %v146_v36 = vmul.f32 0.2, %v145_v29  ;;  %v197_v40 = vmul.f32 0.2, %v196_v34  ;;  %v475_v10 = vmul.f32 %v851_v45, %v851_v45 }
  0x43   :  { %v412_v25 = vmul.f32 0.2, %v411_v37  ;;  %v463_v51 = vmul.f32 0.2, %v462_v43  ;;  %v514_v8 = vmul.f32 0.2, %v513_v59  ;;  %v107_v59 = vmul.f32 %v836_v28, %v836_v28 }
  0x44   :  { %v96_v1 = vsub.f32 1.2, %v95_v33  ;;  %v147_v42 = vsub.f32 1.2, %v146_v36  ;;  %v198_v46 = vsub.f32 1.2, %v197_v40 }
  0x45   :  { %v413_v50 = vsub.f32 1.2, %v412_v25  ;;  %v464_v5 = vsub.f32 1.2, %v463_v51  ;;  %v515_v19 = vsub.f32 1.2, %v514_v8 }
  0x46   :  { %v97_v44 = vmul.f32 %v96_v1, %v89_v49  ;;  %v148_v48 = vmul.f32 %v147_v42, %v140_v52  ;;  %v199_v56 = vmul.f32 %v198_v46, %v191_v60  ;;  %v162_v47 = vmul.f32 0.07739938, %v820_v11 }
  0x47   :  { %v414_v0 = vmul.f32 %v413_v50, %v406_v2  ;;  %v465_v58 = vmul.f32 %v464_v5, %v457_v18  ;;  %v516_v60 = vmul.f32 %v515_v19, %v508_v63 }
  0x48   :  { %v98_v55 = vmul.f32 %v97_v44, %v97_v44  ;;  %v149_v62 = vmul.f32 %v148_v48, %v148_v48  ;;  %v200_v7 = vmul.f32 %v199_v56, %v199_v56 }
  0x49   :  { %v415_v12 = vmul.f32 %v414_v0, %v414_v0  ;;  %v466_v57 = vmul.f32 %v465_v58, %v465_v58  ;;  %v517_v3 = vmul.f32 %v516_v60, %v516_v60 }
  0x4a   :  { %v99_v6 = vmul.f32 %v98_v55, %v97_v44  ;;  %v150_v9 = vmul.f32 %v149_v62, %v148_v48  ;;  %v201_v49 = vmul.f32 %v200_v7, %v199_v56 }
  0x4b   :  { %v416_v52 = vmul.f32 %v415_v12, %v414_v0  ;;  %v467_v24 = vmul.f32 %v466_v57, %v465_v58  ;;  %v518_v16 = vmul.f32 %v517_v3, %v516_v60 }
  0x4c   :  { %v100_v53 = vmul.f32 %v99_v6, %v97_v44  ;;  %v151_v20 = vmul.f32 %v150_v9, %v148_v48  ;;  %v202_v21 = vmul.f32 %v201_v49, %v199_v56 }
  0x4d   :  { %v417_v23 = vmul.f32 %v416_v52, %v414_v0  ;;  %v468_v18 = vmul.f32 %v467_v24, %v465_v58  ;;  %v519_v37 = vmul.f32 %v518_v16, %v516_v60  ;;  %v213_v52 = vmul.f32 0.07739938, %v825_v13 }
  0x4e   :  { %v101_v61 = vmul.f32 %v100_v53, %v97_v44  ;;  %v152_v22 = vmul.f32 %v151_v20, %v148_v48  ;;  %v203_v26 = vmul.f32 %v202_v21, %v199_v56  ;;  %v428_v21 = vmul.f32 0.07739938, %v827_v14 }
  0x4f   :  { %v418_v4 = vmul.f32 %v417_v23, %v414_v0  ;;  %v469_v15 = vmul.f32 %v468_v18, %v465_v58  ;;  %v520_v43 = vmul.f32 %v519_v37, %v516_v60  ;;  %v526_v13 = vmul.f32 %v854_v54, %v854_v54 }
  0x50   :  { %v102_v2 = vmul.f32 %v101_v61, %v836_v28  ;;  %v153_v27 = vmul.f32 %v152_v22, %v840_v31  ;;  %v204_v32 = vmul.f32 %v203_v26, %v843_v35 }
  0x51   :  { %v419_v34 = vmul.f32 %v418_v4, %v847_v38  ;;  %v470_v41 = vmul.f32 %v469_v15, %v851_v45  ;;  %v521_v5 = vmul.f32 %v520_v43, %v854_v54 }
  0x52   :  { %v103_v29 = vmul.f32 0.2, %v102_v2  ;;  %v154_v33 = vmul.f32 0.2, %v153_v27  ;;  %v205_v36 = vmul.f32 0.2, %v204_v32 }
  0x53   :  { %v420_v40 = vmul.f32 0.2, %v419_v34  ;;  %v471_v51 = vmul.f32 0.2, %v470_v41  ;;  %v522_v53 = vmul.f32 0.2, %v521_v5 }
  0x54   :  { %v104_v63 = vsub.f32 1.2, %v103_v29  ;;  %v155_v1 = vsub.f32 1.2, %v154_v33  ;;  %v206_v25 = vsub.f32 1.2, %v205_v36 }
  0x55   :  { %v421_v50 = vsub.f32 1.2, %v420_v40  ;;  %v472_v8 = vsub.f32 1.2, %v471_v51  ;;  %v523_v57 = vsub.f32 1.2, %v522_v53 }
  0x56   :  { %v105_v42 = vmul.f32 %v104_v63, %v97_v44  ;;  %v156_v46 = vmul.f32 %v155_v1, %v148_v48  ;;  %v207_v62 = vmul.f32 %v206_v25, %v199_v56  ;;  %v158_v44 = vmul.f32 %v840_v31, %v840_v31 }
  0x57   :  { %v422_v7 = vmul.f32 %v421_v50, %v414_v0  ;;  %v209_v48 = vmul.f32 %v843_v35, %v843_v35  ;;  %v473_v28 = vmul.f32 %v472_v8, %v465_v58  ;;  %v424_v31 = vmul.f32 %v847_v38, %v847_v38 }
  0x58   :  { %v106_v55 = vmul.f32 %v105_v42, %v105_v42  ;;  %v157_v6 = vmul.f32 %v156_v46, %v156_v46  ;;  %v208_v12 = vmul.f32 %v207_v62, %v207_v62  ;;  %v524_v24 = vmul.f32 %v523_v57, %v516_v60 }
  0x59   :  { %v423_v19 = vmul.f32 %v422_v7, %v422_v7  ;;  %v474_v23 = vmul.f32 %v473_v28, %v473_v28  ;;  %v479_v1 = vmul.f32 0.07739938, %v831_v17  ;;  %v530_v41 = vmul.f32 0.07739938, %v838_v30 }
  0x5a   :  { %v108_v9 = vmul.f32 %v106_v55, %v106_v55  ;;  %v159_v49 = vmul.f32 %v157_v6, %v157_v6  ;;  %v210_v20 = vmul.f32 %v208_v12, %v208_v12  ;;  %v525_v63 = vmul.f32 %v524_v24, %v524_v24 }
  0x5b   :  { %v425_v0 = vmul.f32 %v423_v19, %v423_v19  ;;  %v476_v15 = vmul.f32 %v474_v23, %v474_v23 }
  0x5c   :  { %v109_v56 = vmul.f32 %v108_v9, %v107_v59  ;;  %v160_v61 = vmul.f32 %v159_v49, %v158_v44  ;;  %v211_v22 = vmul.f32 %v210_v20, %v209_v48  ;;  %v527_v45 = vmul.f32 %v525_v63, %v525_v63 }
  0x5d   :  { %v426_v11 = vmul.f32 %v425_v0, %v424_v31  ;;  %v477_v40 = vmul.f32 %v476_v15, %v475_v10 }
  0x5e   :  { %v112_v35 = vsel %vm110_vm0, %v109_v56, %v111_v39  ;;  %v163_v58 = vsel %vm161_vm1, %v160_v61, %v162_v47  ;;  %v214_v27 = vsel %vm212_vm2, %v211_v22, %v213_v52  ;;  %v528_v43 = vmul.f32 %v527_v45, %v526_v13 }
  0x5f   :  { %v215_v2 = vmul.f32 0.412453, %v112_v35  ;;  %v220_v26 = vmul.f32 0.212671, %v112_v35  ;;  %v225_v3 = vmul.f32 0.019334, %v112_v35  ;;  %v429_v25 = vsel %vm427_vm3, %v426_v11, %v428_v21 }
  0x60   :  { %v216_v4 = vmul.f32 0.35758, %v163_v58  ;;  %v221_v38 = vmul.f32 0.71516, %v163_v58  ;;  %v226_v18 = vmul.f32 0.119193, %v163_v58  ;;  %v480_v17 = vsel %vm478_vm4, %v477_v40, %v479_v1 }
  0x61   :  { %v218_v29 = vmul.f32 0.180423, %v214_v27  ;;  %v223_v32 = vmul.f32 0.072169, %v214_v27  ;;  %v228_v16 = vmul.f32 0.950227, %v214_v27  ;;  %v531_v51 = vsel %vm529_vm5, %v528_v43, %v530_v41 }
  0x62   :  { %v217_v33 = vadd.f32 %v216_v4, %v215_v2  ;;  %v222_v60 = vadd.f32 %v221_v38, %v220_v26  ;;  %v227_v34 = vadd.f32 %v226_v18, %v225_v3  ;;  %v532_v55 = vmul.f32 0.412453, %v429_v25 }
  0x63   :  { %v537_v59 = vmul.f32 0.212671, %v429_v25  ;;  %v533_v6 = vmul.f32 0.35758, %v480_v17  ;;  %v535_v44 = vmul.f32 0.180423, %v531_v51 }
  0x64   :  { %v219_v36 = vadd.f32 %v218_v29, %v217_v33  ;;  %v907_v37 = vadd.f32 %v223_v32, %v222_v60  ;;  %v229_v39 = vadd.f32 %v228_v16, %v227_v34  ;;  %v538_v7 = vmul.f32 0.71516, %v480_v17 }
  0x65   :  { %v542_v12 = vmul.f32 0.019334, %v429_v25  ;;  %v534_v53 = vadd.f32 %v533_v6, %v532_v55  ;;  %v540_v19 = vmul.f32 0.072169, %v531_v51  ;;  %v543_v20 = vmul.f32 0.119193, %v480_v17 }
  0x66   :  { %v912_v42 = vmul.f32 1.052111, %v219_v36  ;;  %v915_v14 = vmax.f32 %v907_v37, 0.008856  ;;  %v918_v54 = vmul.f32 0.91841704, %v229_v39  ;;  %v539_v49 = vadd.f32 %v538_v7, %v537_v59 }
  0x67   :  { %v545_v52 = vmul.f32 0.950227, %v531_v51  ;;  %v536_v61 = vadd.f32 %v535_v44, %v534_v53  ;;  %v544_v35 = vadd.f32 %v543_v20, %v542_v12  ;;  %vm289_vm6 = vcmp.gt.f32.partialorder %v907_v37, 0.008856 }
  0x68   :  { %v921_v46 = vmax.f32 %v912_v42, 0.008856  ;;  %v264_v47 = vcvt.s32.f32 %v915_v14  ;;  %v925_v50 = vmax.f32 %v918_v54, 0.008856  ;;  %v929_v31 = vadd.f32 %v540_v19, %v539_v49 }
  0x69   :  { %v931_v23 = vmul.f32 1.052111, %v536_v61  ;;  %v546_v26 = vadd.f32 %v545_v52, %v544_v35  ;;  %vm258_vm7 = vcmp.gt.f32.partialorder %v912_v42, 0.008856  ;;  %vm321_vm8 = vcmp.gt.f32.partialorder %v918_v54, 0.008856 }
  0x6a   :  { %v233_v62 = vcvt.s32.f32 %v921_v46  ;;  %v265_v5 = vmul.f32 0.33333334, %v264_v47  ;;  %v296_v30 = vcvt.s32.f32 %v925_v50  ;;  %v934_v24 = vmax.f32 %v929_v31, 0.008856 }
  0x6b   :  { %v937_v27 = vmax.f32 %v931_v23, 0.008856  ;;  %v941_v16 = vmul.f32 0.91841704, %v546_v26  ;;  %vm575_vm0 = vcmp.gt.f32.partialorder %v931_v23, 0.008856 }
  0x6c   :  { %v234_v8 = vmul.f32 0.33333334, %v233_v62  ;;  %v266_v9 = vsub.f32 1.4199671e+09, %v265_v5  ;;  %v297_v48 = vmul.f32 0.33333334, %v296_v30  ;;  %v581_v18 = vcvt.s32.f32 %v934_v24 }
  0x6d   :  { %v550_v32 = vcvt.s32.f32 %v937_v27  ;;  %v945_v15 = vmax.f32 %v941_v16, 0.008856  ;;  %vm606_vm1 = vcmp.gt.f32.partialorder %v929_v31, 0.008856  ;;  %vm638_vm2 = vcmp.gt.f32.partialorder %v941_v16, 0.008856 }
  0x6e   :  { %v235_v28 = vsub.f32 1.4199671e+09, %v234_v8  ;;  %v748_v56 = vtrunc.f32 %v266_v9  ;;  %v298_v57 = vsub.f32 1.4199671e+09, %v297_v48  ;;  %v582_v60 = vmul.f32 0.33333334, %v581_v18 }
  0x6f   :  { %v551_v11 = vmul.f32 0.33333334, %v550_v32  ;;  %v613_v40 = vcvt.s32.f32 %v945_v15 }
  0x70   :  { %v746_v0 = vtrunc.f32 %v235_v28  ;;  %v749_v21 = vcvt.f32.s32 %v748_v56  ;;  %v750_v22 = vtrunc.f32 %v298_v57  ;;  %v583_v36 = vsub.f32 1.4199671e+09, %v582_v60 }
  0x71   :  { %v552_v1 = vsub.f32 1.4199671e+09, %v551_v11  ;;  %v614_v17 = vmul.f32 0.33333334, %v613_v40 }
  0x72   :  { %v747_v58 = vcvt.f32.s32 %v746_v0  ;;  %v269_v2 = vmul.f32 %v749_v21, %v749_v21  ;;  %v751_v3 = vcvt.f32.s32 %v750_v22  ;;  %v760_v25 = vtrunc.f32 %v583_v36 }
  0x73   :  { %v758_v47 = vtrunc.f32 %v552_v1  ;;  %v615_v30 = vsub.f32 1.4199671e+09, %v614_v17 }
  0x74   :  { %v238_v4 = vmul.f32 %v747_v58, %v747_v58  ;;  %v270_v38 = vmul.f32 %v749_v21, %v269_v2  ;;  %v301_v29 = vmul.f32 %v751_v3, %v751_v3  ;;  %v761_v59 = vcvt.f32.s32 %v760_v25 }
  0x75   :  { %v759_v5 = vcvt.f32.s32 %v758_v47  ;;  %v762_v12 = vtrunc.f32 %v615_v30 }
  0x76   :  { %v239_v10 = vmul.f32 %v747_v58, %v238_v4  ;;  %v271_v33 = vmul.f32 %v270_v38, %v915_v14  ;;  %v302_v34 = vmul.f32 %v751_v3, %v301_v29  ;;  %v586_v7 = vmul.f32 %v761_v59, %v761_v59 }
  0x77   :  { %v555_v9 = vmul.f32 %v759_v5, %v759_v5  ;;  %v763_v56 = vcvt.f32.s32 %v762_v12  ;;  %v290_v12 = vmul.f32 7.787, %v907_v37 }
  0x78   :  { %v240_v63 = vmul.f32 %v239_v10, %v921_v46  ;;  %v272_v13 = vmul.f32 0.33333334, %v271_v33  ;;  %v303_v39 = vmul.f32 %v302_v34, %v925_v50  ;;  %v587_v49 = vmul.f32 %v761_v59, %v586_v7 }
  0x79   :  { %v556_v28 = vmul.f32 %v759_v5, %v555_v9 }
  0x7a   :  { %v241_v45 = vmul.f32 0.33333334, %v240_v63  ;;  %v273_v41 = vsub.f32 1.3333334, %v272_v13  ;;  %v304_v43 = vmul.f32 0.33333334, %v303_v39  ;;  %v588_v57 = vmul.f32 %v587_v49, %v934_v24 }
  0x7b   :  { %v557_v0 = vmul.f32 %v556_v28, %v937_v27 }
  0x7c   :  { %v242_v51 = vsub.f32 1.3333334, %v241_v45  ;;  %v274_v55 = vmul.f32 %v749_v21, %v273_v41  ;;  %v305_v62 = vsub.f32 1.3333334, %v304_v43  ;;  %v618_v21 = vmul.f32 %v763_v56, %v763_v56 }
  0x7d   :  { %v558_v26 = vmul.f32 0.33333334, %v557_v0  ;;  %v259_v0 = vmul.f32 7.787, %v912_v42 }
  0x7e   :  { %v243_v6 = vmul.f32 %v747_v58, %v242_v51  ;;  %v275_v44 = vmul.f32 %v274_v55, %v274_v55  ;;  %v306_v8 = vmul.f32 %v751_v3, %v305_v62  ;;  %v589_v58 = vmul.f32 0.33333334, %v588_v57 }
  0x7f   :  { %v619_v3 = vmul.f32 %v763_v56, %v618_v21  ;;  %v559_v32 = vsub.f32 1.3333334, %v558_v26 }
  0x80   :  { %v244_v48 = vmul.f32 %v243_v6, %v243_v6  ;;  %v276_v53 = vmul.f32 %v275_v44, %v274_v55  ;;  %v307_v19 = vmul.f32 %v306_v8, %v306_v8  ;;  %v590_v18 = vsub.f32 1.3333334, %v589_v58 }
  0x81   :  { %v620_v10 = vmul.f32 %v619_v3, %v945_v15  ;;  %v560_v63 = vmul.f32 %v759_v5, %v559_v32  ;;  %v322_v58 = vmul.f32 7.787, %v918_v54 }
  0x82   :  { %v245_v20 = vmul.f32 %v244_v48, %v243_v6  ;;  %v277_v52 = vmul.f32 %v276_v53, %v915_v14  ;;  %v308_v61 = vmul.f32 %v307_v19, %v306_v8  ;;  %v591_v34 = vmul.f32 %v761_v59, %v590_v18 }
  0x83   :  { %v621_v13 = vmul.f32 0.33333334, %v620_v10  ;;  %v561_v45 = vmul.f32 %v560_v63, %v560_v63 }
  0x84   :  { %v246_v35 = vmul.f32 %v245_v20, %v921_v46  ;;  %v278_v22 = vmul.f32 0.33333334, %v277_v52  ;;  %v309_v2 = vmul.f32 %v308_v61, %v925_v50  ;;  %v592_v1 = vmul.f32 %v591_v34, %v591_v34 }
  0x85   :  { %v622_v41 = vsub.f32 1.3333334, %v621_v13  ;;  %v562_v51 = vmul.f32 %v561_v45, %v560_v63 }
  0x86   :  { %v247_v4 = vmul.f32 0.33333334, %v246_v35  ;;  %v279_v38 = vsub.f32 1.3333334, %v278_v22  ;;  %v310_v29 = vmul.f32 0.33333334, %v309_v2  ;;  %v593_v47 = vmul.f32 %v592_v1, %v591_v34 }
  0x87   :  { %v623_v62 = vmul.f32 %v763_v56, %v622_v41  ;;  %v563_v5 = vmul.f32 %v562_v51, %v937_v27 }
  0x88   :  { %v248_v33 = vsub.f32 1.3333334, %v247_v4  ;;  %v280_v60 = vmul.f32 %v279_v38, %v274_v55  ;;  %v311_v11 = vsub.f32 1.3333334, %v310_v29  ;;  %v594_v55 = vmul.f32 %v593_v47, %v934_v24 }
  0x89   :  { %v564_v53 = vmul.f32 0.33333334, %v563_v5  ;;  %v291_v38 = vadd.f32 0.13793103, %v290_v12 }
  0x8a   :  { %v249_v36 = vmul.f32 %v248_v33, %v243_v6  ;;  %v281_v39 = vmul.f32 %v280_v60, %v280_v60  ;;  %v312_v40 = vmul.f32 %v311_v11, %v306_v8  ;;  %v624_v6 = vmul.f32 %v623_v62, %v623_v62 }
  0x8b   :  { %v595_v9 = vmul.f32 0.33333334, %v594_v55  ;;  %v565_v52 = vsub.f32 1.3333334, %v564_v53  ;;  %v260_v11 = vadd.f32 0.13793103, %v259_v0 }
  0x8c   :  { %v250_v25 = vmul.f32 %v249_v36, %v249_v36  ;;  %v282_v43 = vmul.f32 %v281_v39, %v280_v60  ;;  %v313_v17 = vmul.f32 %v312_v40, %v312_v40  ;;  %v625_v49 = vmul.f32 %v624_v6, %v623_v62 }
  0x8d   :  { %v596_v56 = vsub.f32 1.3333334, %v595_v9  ;;  %v566_v2 = vmul.f32 %v565_v52, %v560_v63  ;;  %v323_v39 = vadd.f32 0.13793103, %v322_v58  ;;  %v607_v55 = vmul.f32 7.787, %v929_v31 }
  0x8e   :  { %v251_v30 = vmul.f32 %v250_v25, %v249_v36  ;;  %v283_v44 = vmul.f32 %v282_v43, %v915_v14  ;;  %v314_v59 = vmul.f32 %v313_v17, %v312_v40  ;;  %v626_v57 = vmul.f32 %v625_v49, %v945_v15 }
  0x8f   :  { %v597_v35 = vmul.f32 %v596_v56, %v591_v34  ;;  %v567_v32 = vmul.f32 %v566_v2, %v566_v2  ;;  %v608_v12 = vadd.f32 0.13793103, %v607_v55  ;;  %v639_v0 = vmul.f32 7.787, %v941_v16 }
  0x90   :  { %v252_v7 = vmul.f32 %v251_v30, %v921_v46  ;;  %v284_v8 = vmul.f32 0.33333334, %v283_v44  ;;  %v315_v48 = vmul.f32 %v314_v59, %v925_v50  ;;  %v627_v26 = vmul.f32 0.33333334, %v626_v57 }
  0x91   :  { %v598_v18 = vmul.f32 %v597_v35, %v597_v35  ;;  %v568_v1 = vmul.f32 %v567_v32, %v566_v2 }
  0x92   :  { %v253_v19 = vmul.f32 0.33333334, %v252_v7  ;;  %v285_v28 = vsub.f32 1.3333334, %v284_v8  ;;  %v316_v20 = vmul.f32 0.33333334, %v315_v48 }
  0x93   :  { %v628_v10 = vsub.f32 1.3333334, %v627_v26  ;;  %v569_v25 = vmul.f32 %v568_v1, %v937_v27  ;;  %v640_v26 = vadd.f32 0.13793103, %v639_v0  ;;  %v786_v0 = vmov 0.7853982  }
  0x94   :  { %v254_v61 = vsub.f32 1.3333334, %v253_v19  ;;  %v286_v21 = vmul.f32 %v285_v28, %v280_v60  ;;  %v317_v22 = vsub.f32 1.3333334, %v316_v20  ;;  %v599_v60 = vmul.f32 %v598_v18, %v597_v35 }
  0x95   :  { %v629_v45 = vmul.f32 %v628_v10, %v623_v62  ;;  %v570_v62 = vmul.f32 0.33333334, %v569_v25 }
  0x96   :  { %v255_v3 = vmul.f32 %v254_v61, %v249_v36  ;;  %v287_v4 = vmul.f32 %v286_v21, %v286_v21  ;;  %v318_v29 = vmul.f32 %v317_v22, %v312_v40  ;;  %v600_v40 = vmul.f32 %v599_v60, %v934_v24 }
  0x97   :  { %v630_v43 = vmul.f32 %v629_v45, %v629_v45  ;;  %v571_v54 = vsub.f32 1.3333334, %v570_v62 }
  0x98   :  { %v256_v33 = vmul.f32 %v255_v3, %v255_v3  ;;  %v288_v13 = vmul.f32 %v287_v4, %v915_v14  ;;  %v319_v34 = vmul.f32 %v318_v29, %v318_v29  ;;  %v601_v47 = vmul.f32 0.33333334, %v600_v40 }
  0x99   :  { %v572_v9 = vmul.f32 %v571_v54, %v566_v2 }
  0x9a   :  { %v257_v63 = vmul.f32 %v256_v33, %v921_v46  ;;  %v292_v36 = vsel %vm289_vm6, %v288_v13, %v291_v38  ;;  %v320_v41 = vmul.f32 %v319_v34, %v925_v50  ;;  %v631_v46 = vmul.f32 %v630_v43, %v629_v45 }
  0x9b   :  { %v602_v37 = vsub.f32 1.3333334, %v601_v47  ;;  %v576_v50 = vmul.f32 7.787, %v931_v23  ;;  %v573_v19 = vmul.f32 %v572_v9, %v572_v9 }
  0x9c   :  { %v261_v14 = vsel %vm258_vm7, %v257_v63, %v260_v11  ;;  %v324_v17 = vsel %vm321_vm8, %v320_v41, %v323_v39  ;;  %v632_v6 = vmul.f32 %v631_v46, %v945_v15 }
  0x9d   :  { %v325_v51 = vsub.f32 %v261_v14, %v292_v36  ;;  %v327_v30 = vsub.f32 %v292_v36, %v324_v17  ;;  %v603_v42 = vmul.f32 %v602_v37, %v597_v35  ;;  %v577_v28 = vadd.f32 0.13793103, %v576_v50 }
  0x9e   :  { %v633_v20 = vmul.f32 0.33333334, %v632_v6  ;;  %v574_v52 = vmul.f32 %v573_v19, %v937_v27 }
  0x9f   :  { %v977_v44 = vmul.f32 500.0, %v325_v51  ;;  %v980_v59 = vmul.f32 200.0, %v327_v30  ;;  %v604_v56 = vmul.f32 %v603_v42, %v603_v42 }
  0xa0   :  { %v634_v61 = vsub.f32 1.3333334, %v633_v20  ;;  %v578_v21 = vsel %vm575_vm0, %v574_v52, %v577_v28  ;;  %v785_v20 = vmov 0.0  }
  0xa1   :  { %v984_v5 = vand.u32 2147483647, %v977_v44  ;;  %vm363_vm9 = vcmp.ne.f32.partialorder %v977_v44, %v977_v44  ;;  %v990_v7 = vand.u32 2147483647, %v980_v59  ;;  %vm364_vm10 = vcmp.ne.f32.partialorder %v980_v59, %v980_v59 }
  0xa2   :  { %vm994_vm11 = vmor %vm363_vm9, %vm364_vm10  ;;  %v605_v57 = vmul.f32 %v604_v56, %v934_v24  ;;  %v635_v22 = vmul.f32 %v634_v61, %v629_v45  ;;  %vm359_vm10 = vcmp.lt.s32.totalorder %v977_v44, 0 }
  0xa3   :  { %vm369_vm12 = vcmp.eq.s32.totalorder %v984_v5, inf  ;;  %v331_v48 = vmin.f32 %v984_v5, %v990_v7  ;;  %v332_v53 = vmax.f32 %v984_v5, %v990_v7  ;;  %vm353_vm13 = vcmp.gt.f32.partialorder %v990_v7, %v984_v5 }
  0xa4   :  { %vm370_vm14 = vcmp.eq.s32.totalorder %v990_v7, inf  ;;  %v609_v35 = vsel %vm606_vm1, %v605_v57, %v608_v12  ;;  %v636_v2 = vmul.f32 %v635_v22, %v635_v22  ;;  %v360_v52 = vsel %vm359_vm10, 3.1415927, %v785_v20 }
  0xa5   :  { %vm1006_vm15 = vmand %vm369_vm12, %vm370_vm14  ;;  %770 = vrcp.f32 %v332_v53  ;;  %v642_v58 = vsub.f32 %v578_v21, %v609_v35  ;;  %vm356_vm12 = vcmp.lt.f32.partialorder %v977_v44, 0.0  ;;  %vm361_vm14 = vcmp.eq.f32.partialorder %v980_v59, 0.0 }
  0xa6   :  { %v637_v3 = vmul.f32 %v636_v2, %v945_v15  ;;  %v368_v21 = vsel %vm356_vm12, 2.3561945, %v786_v0  ;;  %v374_v5 = vand.u32 2147483648, %v980_v59 }
  0xa7   :  { %v1017_v23 = vmul.f32 500.0, %v642_v58 }
  0xa8   :  { %v641_v31 = vsel %vm638_vm2, %v637_v3, %v640_v26 }
  0xa9   :  { %v644_v4 = vsub.f32 %v609_v35, %v641_v31  ;;  %v1022_v24 = vand.u32 2147483647, %v1017_v23  ;;  %vm680_vm3 = vcmp.ne.f32.partialorder %v1017_v23, %v1017_v23 }
  0xab   :  { %v1019_v27 = vmul.f32 200.0, %v644_v4  ;;  %vm686_vm6 = vcmp.eq.s32.totalorder %v1022_v24, inf }
  0xad   :  { %v1027_v29 = vand.u32 2147483647, %v1019_v27  ;;  %vm681_vm4 = vcmp.ne.f32.partialorder %v1019_v27, %v1019_v27 }
  0xae   :  { %vm1031_vm5 = vmor %vm680_vm3, %vm681_vm4 }
  0xaf   :  { %v648_v32 = vmin.f32 %v1022_v24, %v1027_v29  ;;  %v649_v10 = vmax.f32 %v1022_v24, %v1027_v29  ;;  %vm670_vm7 = vcmp.gt.f32.partialorder %v1027_v29, %v1022_v24  ;;  %vm687_vm8 = vcmp.eq.s32.totalorder %v1027_v29, inf }
  0xb0   :  { %vm1043_vm9 = vmand %vm686_vm6, %vm687_vm8 }
  0xb1   :  { %772 = vrcp.f32 %v649_v10 }
  0xb2   :  { %v771_v38 = vpop.eup %770 }
  0xb3   :  { %v334_v18 = vmul.f32 %v771_v38, %v331_v48 }
  0xb5   :  { %v335_v15 = vmul.f32 %v334_v18, %v334_v18 }
  0xb7   :  { %v336_v33 = vmul.f32 0.002785687, %v335_v15 }
  0xb9   :  { %v337_v13 = vadd.f32 -0.015866, %v336_v33 }
  0xbb   :  { %v338_v60 = vmul.f32 %v337_v13, %v335_v15  ;;  %v691_v13 = vand.u32 2147483648, %v1019_v27 }
  0xbd   :  { %v339_v34 = vadd.f32 0.04247222, %v338_v60 }
  0xbe   :  { %v773_v63 = vpop.eup %772 }
  0xbf   :  { %v340_v39 = vmul.f32 %v339_v34, %v335_v15  ;;  %v651_v40 = vmul.f32 %v773_v63, %v648_v32 }
  0xc1   :  { %v341_v1 = vadd.f32 -0.074975304, %v340_v39  ;;  %v652_v25 = vmul.f32 %v651_v40, %v651_v40 }
  0xc3   :  { %v342_v45 = vmul.f32 %v341_v1, %v335_v15  ;;  %v653_v14 = vmul.f32 0.002785687, %v652_v25 }
  0xc5   :  { %v343_v36 = vadd.f32 0.1064488, %v342_v45  ;;  %v654_v17 = vadd.f32 -0.015866, %v653_v14 }
  0xc7   :  { %v344_v41 = vmul.f32 %v343_v36, %v335_v15  ;;  %v655_v62 = vmul.f32 %v654_v17, %v652_v25 }
  0xc9   :  { %v345_v43 = vadd.f32 -0.14207031, %v344_v41  ;;  %v656_v30 = vadd.f32 0.04247222, %v655_v62 }
  0xcb   :  { %v346_v47 = vmul.f32 %v345_v43, %v335_v15  ;;  %v657_v54 = vmul.f32 %v656_v30, %v652_v25 }
  0xcd   :  { %v347_v51 = vadd.f32 0.19993454, %v346_v47  ;;  %v658_v50 = vadd.f32 -0.074975304, %v657_v54 }
  0xcf   :  { %v348_v46 = vmul.f32 %v347_v51, %v335_v15  ;;  %v659_v6 = vmul.f32 %v658_v50, %v652_v25 }
  0xd1   :  { %v349_v37 = vadd.f32 -0.33333147, %v348_v46  ;;  %v660_v12 = vadd.f32 0.1064488, %v659_v6 }
  0xd3   :  { %v350_v55 = vmul.f32 %v349_v37, %v335_v15  ;;  %v661_v53 = vmul.f32 %v660_v12, %v652_v25 }
  0xd5   :  { %v351_v42 = vmul.f32 %v350_v55, %v334_v18  ;;  %v662_v28 = vadd.f32 -0.14207031, %v661_v53 }
  0xd7   :  { %v352_v9 = vadd.f32 %v351_v42, %v334_v18  ;;  %v663_v57 = vmul.f32 %v662_v28, %v652_v25 }
  0xd9   :  { %v354_v48 = vsub.f32 1.5707964, %v352_v9  ;;  %v664_v22 = vadd.f32 0.19993454, %v663_v57 }
  0xdb   :  { %v355_v19 = vsel %vm353_vm13, %v354_v48, %v352_v9  ;;  %v665_v7 = vmul.f32 %v664_v22, %v652_v25  ;;  %vm676_vm13 = vcmp.lt.s32.totalorder %v1017_v23, 0 }
  0xdc   :  { %v357_v56 = vsub.f32 3.1415927, %v355_v19  ;;  %v677_v15 = vsel %vm676_vm13, 3.1415927, %v785_v20 }
  0xdd   :  { %v666_v26 = vadd.f32 -0.33333147, %v665_v7 }
  0xde   :  { %v358_v61 = vsel %vm356_vm12, %v357_v56, %v355_v19 }
  0xdf   :  { %v362_v35 = vsel %vm361_vm14, %v360_v52, %v358_v61  ;;  %v667_v31 = vmul.f32 %v666_v26, %v652_v25 }
  0xe0   :  { %v366_v58 = vsel %vm994_vm11, nan, %v362_v35  ;;  %vm673_vm11 = vcmp.lt.f32.partialorder %v1017_v23, 0.0 }
  0xe1   :  { %v372_v44 = vsel %vm1006_vm15, %v368_v21, %v366_v58  ;;  %v668_v4 = vmul.f32 %v667_v31, %v651_v40  ;;  %vm678_vm15 = vcmp.eq.f32.partialorder %v1019_v27, 0.0  ;;  %v685_v32 = vsel %vm673_vm11, 2.3561945, %v786_v0 }
  0xe2   :  { %v373_v2 = vand.u32 2147483647, %v372_v44 }
  0xe3   :  { %v669_v38 = vadd.f32 %v668_v4, %v651_v40 }
  0xe4   :  { %v375_v3 = vor.u32 %v374_v5, %v373_v2 }
  0xe5   :  { %v671_v18 = vsub.f32 1.5707964, %v669_v38 }
  0xe6   :  { %v377_v34 = vadd.f32 6.2831855, %v375_v3  ;;  %vm376_vm0 = vcmp.lt.f32.partialorder %v375_v3, 0.0 }
  0xe7   :  { %v672_v8 = vsel %vm670_vm7, %v671_v18, %v669_v38 }
  0xe8   :  { %v674_v59 = vsub.f32 3.1415927, %v672_v8  ;;  %v378_v23 = vsel %vm376_vm0, %v377_v34, %v375_v3 }
  0xea   :  { %v675_v49 = vsel %vm673_vm11, %v674_v59, %v672_v8 }
  0xeb   :  { %v679_v10 = vsel %vm678_vm15, %v677_v15, %v675_v49 }
  0xec   :  { %v683_v33 = vsel %vm1031_vm5, nan, %v679_v10 }
  0xed   :  { %v689_v60 = vsel %vm1043_vm9, %v685_v32, %v683_v33 }
  0xee   :  { %v690_v24 = vand.u32 2147483647, %v689_v60 }
  0xf0   :  { %v692_v29 = vor.u32 %v691_v13, %v690_v24 }
  0xf2   :  { %vm693_vm1 = vcmp.lt.f32.partialorder %v692_v29, 0.0  ;;  %v694_v39 = vadd.f32 6.2831855, %v692_v29 }
  0xf4   :  { %v695_v1 = vsel %vm693_vm1, %v694_v39, %v692_v29 }
  0xf5   :  { %v696_v45 = vsub.f32 %v378_v23, %v695_v1 }
  0xf7   :  { %v698_v63 = vmul.f32 %v696_v45, %v696_v45 }
  0xf9   :  { %699 = vadd.xlane.f32.xlu0 %v698_v63 }
 0x182   :  { %v700_v36 = vpop.xlane.xlu0 %699 }
 0x183   :  { %v701_v40 = vrot.slane %v700_v36, 4 }
 0x185   :  { %v702_v16 = vadd.f32 %v701_v40, %v700_v36 }
 0x187   :  { %v703_v41 = vrot.slane %v702_v16, 2 }
 0x189   :  { %v704_v25 = vadd.f32 %v703_v41, %v702_v16 }
 0x18b   :  { %v705_v27 = vrot.slane %v704_v25, 1 }
 0x18d   :  { %v706_v43 = vadd.f32 %v705_v27, %v704_v25 }
 0x18f   :  { %764 = vpush %v706_v43 }
 0x1c0   :  { %s765_s1 = spop %764 }
 0x1c1   :  { %s708_s22 = sadd.f32 %s765_s1, %s697_s0 }
 0x1c3   :  { %710 = sst [smem:[#allocation2]] %s708_s22 }
 0x1c4   :  { %718 = dma.smem_to_hbm %s787_s23, 16, %s1074_s2, [#allocation3]  }
 0x1c5   :  { %782 = dma.done.wait [#allocation3], 16  }
 0x1c6   :  { %783 = vsyncadd [#allocation3], 4294967280 }
 0x1c7   :  { %722 = sfence }
 0x1c8   :  { %723 = vsyncpa [#allocation3], 1 }

</bundles_post_ra>
